<compile_context>
chip_gen: v5e
topology: v5e:2x2
jax: 0.10.0
libtpu: 0.0.40
codegen_flags: <defaults>
</compile_context>

<pallas_src>
import jax
import jax.numpy as jnp
from jax.experimental import pallas as pl
from jax.experimental.pallas import tpu as pltpu

IN_DIM = 28 * 28          # 784
D_PAD = 896               # 7 * 128 -> lane-dense padded feature dim
H1, H2, H3 = 128, 64, 32


def _round_up(x, m):
    return (x + m - 1) // m * m


def _autoencoder_kernel(x_ref,
                        w1_ref, b1_ref, w2_ref, b2_ref, w3_ref, b3_ref,
                        w4_ref, b4_ref, w5_ref, b5_ref, w6_ref, b6_ref,
                        o_ref):
    """Full encoder+decoder forward for one batch tile.

    All six matmuls run on the MXU with f32 accumulation; ReLU / bias adds run
    on the VPU and sigmoid uses the EUP.  Activations are kept f32 between
    layers (no bf16 elementwise work) and cast to the weight dtype only at the
    matmul inputs.  Everything fits in VMEM, so no K-tiling is needed.
    """
    h = x_ref[...]  # (bt, D_PAD) f32

    def dense(h, w_ref, b_ref):
        return jnp.dot(h.astype(w_ref.dtype), w_ref[...],
                       preferred_element_type=jnp.float32) + b_ref[...]

    # ---- encoder ----
    h = jnp.maximum(dense(h, w1_ref, b1_ref), 0.0)
    h = jnp.maximum(dense(h, w2_ref, b2_ref), 0.0)
    h = dense(h, w3_ref, b3_ref)          # bottleneck: no ReLU

    # ---- decoder ----
    h = jnp.maximum(dense(h, w4_ref, b4_ref), 0.0)
    h = jnp.maximum(dense(h, w5_ref, b5_ref), 0.0)
    h = dense(h, w6_ref, b6_ref)          # final linear

    # sigmoid (EUP exp path)
    o_ref[...] = jax.nn.sigmoid(h).astype(o_ref.dtype)


def autoencoder_forward(x, params, *, batch_tile=256, weight_dtype=jnp.float32):
    """x: (B, 784) float32.  params: dict of f32 weights/biases.  Returns (B, 784) f32.

    batch_tile: rows per grid step.  Default 256 fills the MXU M dimension on
    v6e/v7x; pass ~128 on v5e or the largest multiple of 8 dividing B.
    weight_dtype: jnp.bfloat16 recommended on v6e/v7x (f32 accumulation kept).
    """
    B, D = x.shape
    assert D == IN_DIM

    # ---- batch tiling: fat tiles, never larger than the (rounded-up) batch.
    bt = max(8, _round_up(min(batch_tile, _round_up(B, 8)), 8))
    B_pad = _round_up(B, bt)

    # ---- pad features 784 -> 896 (lane-dense loads/stores, clean MXU tiles).
    x_p = jnp.pad(x.astype(jnp.float32), ((0, B_pad - B), (0, D_PAD - IN_DIM)))

    wdt = jnp.dtype(weight_dtype)
    w1 = jnp.pad(params["w1"], ((0, D_PAD - IN_DIM), (0, 0))).astype(wdt)
    w2 = params["w2"].astype(wdt)
    w3 = params["w3"].astype(wdt)
    w4 = params["w4"].astype(wdt)
    w5 = params["w5"].astype(wdt)
    w6 = jnp.pad(params["w6"], ((0, 0), (0, D_PAD - IN_DIM))).astype(wdt)
    # Biases stay f32 (added post-accumulation on the VPU).
    b1 = params["b1"].astype(jnp.float32)
    b2 = params["b2"].astype(jnp.float32)
    b3 = params["b3"].astype(jnp.float32)
    b4 = params["b4"].astype(jnp.float32)
    b5 = params["b5"].astype(jnp.float32)
    b6 = jnp.pad(params["b6"], ((0, 0), (0, D_PAD - IN_DIM))).astype(jnp.float32)

    weights_and_biases = (w1, b1, w2, b2, w3, b3, w4, b4, w5, b5, w6, b6)

    # Whole-array blocks for weights/biases (block shape == full array shape
    # satisfies the TPU (8,128) tiling rule); batch is tiled on the grid.
    def full_spec(arr):
        return pl.BlockSpec(arr.shape, lambda i: (0,) * arr.ndim)

    grid = (B_pad // bt,)
    in_specs = [pl.BlockSpec((bt, D_PAD), lambda i: (i, 0))]
    in_specs += [full_spec(a) for a in weights_and_biases]
    out_spec = pl.BlockSpec((bt, D_PAD), lambda i: (i, 0))

    # ---- advisory cost estimate for XLA's surrounding schedule.
    n_w = D_PAD * H1 + H1 * H2 + H2 * H3 + H3 * H2 + H2 * H1 + H1 * D_PAD
    n_b = H1 + H2 + H3 + H2 + H1 + D_PAD
    cost = pl.CostEstimate(
        flops=2 * B_pad * n_w,
        transcendentals=B_pad * D_PAD,                       # sigmoid
        bytes_accessed=(B_pad * D_PAD * 4 * 2                # x in + o out (f32)
                        + n_w * wdt.itemsize + n_b * 4),
    )

    # ---- VMEM budget: x/o tiles + weights are each double-buffered; keep the
    # limit under v7x's 64 MiB physical VMEM.
    tile_bytes = bt * D_PAD * 4
    vmem_needed = 4 * tile_bytes                              # x & o, 2 bufs each
    vmem_needed += 2 * (n_w * wdt.itemsize + n_b * 4)         # params, 2 bufs
    vmem_needed += 6 * tile_bytes                             # in-kernel intermediates
    vmem_limit = int(min(max(vmem_needed, 32 * 1024 * 1024), 60 * 1024 * 1024))

    out = pl.pallas_call(
        _autoencoder_kernel,
        out_shape=jax.ShapeDtypeStruct((B_pad, D_PAD), jnp.float32),
        grid_spec=pltpu.PrefetchScalarGridSpec(
            num_scalar_prefetch=0,
            grid=grid,
            in_specs=in_specs,
            out_specs=out_spec,
        ),
        compiler_params=pltpu.CompilerParams(
            dimension_semantics=("parallel",),
            vmem_limit_bytes=vmem_limit,
        ),
        cost_estimate=cost,
    )(x_p, *weights_and_biases)

    return out[:B, :IN_DIM]


def init_params(key):
    """Deterministic init matching nn.Linear shapes (stored transposed), f32."""
    dims = [(IN_DIM, H1), (H1, H2), (H2, H3),   # encoder
            (H3, H2), (H2, H1), (H1, IN_DIM)]   # decoder
    params = {}
    keys = jax.random.split(key, len(dims))
    for idx, ((fan_in, fan_out), k) in enumerate(zip(dims, keys), start=1):
        bound = 1.0 / jnp.sqrt(fan_in)
        kw, kb = jax.random.split(k)
        params[f"w{idx}"] = jax.random.uniform(
            kw, (fan_in, fan_out), jnp.float32, -bound, bound)
        # biases kept 2-D (1, fan_out) so they broadcast cleanly in-kernel
        params[f"b{idx}"] = jax.random.uniform(
            kb, (1, fan_out), jnp.float32, -bound, bound)
    return params


def reference_forward(x, params):
    """Pure-JAX reference for a correctness check."""
    h = x
    h = jnp.maximum(h @ params["w1"] + params["b1"], 0.0)
    h = jnp.maximum(h @ params["w2"] + params["b2"], 0.0)
    h = h @ params["w3"] + params["b3"]
    h = jnp.maximum(h @ params["w4"] + params["b4"], 0.0)
    h = jnp.maximum(h @ params["w5"] + params["b5"], 0.0)
    h = h @ params["w6"] + params["b6"]
    return jax.nn.sigmoid(h)


if __name__ == "__main__":
    key = jax.random.PRNGKey(0)
    k_params, k_x = jax.random.split(key)

    params = init_params(k_params)
    B = 16  # small batch; forward consumes images flattened to (B, 28*28)
    x = jax.random.uniform(k_x, (B, IN_DIM), jnp.float32)

    ref = reference_forward(x, params)

    # f32 weights: tight check.
    out_f32 = jax.block_until_ready(
        autoencoder_forward(x, params, batch_tile=256, weight_dtype=jnp.float32))
    assert out_f32.shape == (B, IN_DIM)
    assert jnp.allclose(out_f32, ref, atol=1e-5, rtol=1e-5), "f32 mismatch vs reference"

    # bf16 weights (v6e/v7x fast path): loose check (sigmoid output in [0,1]).
    out_bf16 = jax.block_until_ready(
        autoencoder_forward(x, params, batch_tile=256, weight_dtype=jnp.bfloat16))
    assert out_bf16.shape == (B, IN_DIM)
    assert jnp.allclose(out_bf16, ref, atol=3e-2, rtol=0.0), "bf16 mismatch vs reference"

    print("KERNEL_OK")
</pallas_src>

<mosaic_0001>
module attributes {stable_mosaic.version = 11 : i64} {
  func.func @_autoencoder_kernel(%arg0: i32, %arg1: memref<16x896xf32, #tpu.memory_space<vmem>>, %arg2: memref<896x128xf32, #tpu.memory_space<vmem>>, %arg3: memref<1x128xf32, #tpu.memory_space<vmem>>, %arg4: memref<128x64xf32, #tpu.memory_space<vmem>>, %arg5: memref<1x64xf32, #tpu.memory_space<vmem>>, %arg6: memref<64x32xf32, #tpu.memory_space<vmem>>, %arg7: memref<1x32xf32, #tpu.memory_space<vmem>>, %arg8: memref<32x64xf32, #tpu.memory_space<vmem>>, %arg9: memref<1x64xf32, #tpu.memory_space<vmem>>, %arg10: memref<64x128xf32, #tpu.memory_space<vmem>>, %arg11: memref<1x128xf32, #tpu.memory_space<vmem>>, %arg12: memref<128x896xf32, #tpu.memory_space<vmem>>, %arg13: memref<1x896xf32, #tpu.memory_space<vmem>>, %arg14: memref<16x896xf32, #tpu.memory_space<vmem>>) attributes {dimension_semantics = [#tpu.dimension_semantics<parallel>], iteration_bounds = array<i64: 1>, scalar_prefetch = 0 : i64, scratch_operands = 0 : i64, tpu.core_type = #tpu.core_type<tc>, window_params = [{transform_indices = @transform_0, window_bounds = array<i64: 16, 896>}, {pipeline_mode = #tpu.pipeline_mode<synchronous>, transform_indices = @transform_1, window_bounds = array<i64: 896, 128>}, {pipeline_mode = #tpu.pipeline_mode<synchronous>, transform_indices = @transform_2, window_bounds = array<i64: 1, 128>}, {pipeline_mode = #tpu.pipeline_mode<synchronous>, transform_indices = @transform_3, window_bounds = array<i64: 128, 64>}, {pipeline_mode = #tpu.pipeline_mode<synchronous>, transform_indices = @transform_4, window_bounds = array<i64: 1, 64>}, {pipeline_mode = #tpu.pipeline_mode<synchronous>, transform_indices = @transform_5, window_bounds = array<i64: 64, 32>}, {pipeline_mode = #tpu.pipeline_mode<synchronous>, transform_indices = @transform_6, window_bounds = array<i64: 1, 32>}, {pipeline_mode = #tpu.pipeline_mode<synchronous>, transform_indices = @transform_7, window_bounds = array<i64: 32, 64>}, {pipeline_mode = #tpu.pipeline_mode<synchronous>, transform_indices = @transform_8, window_bounds = array<i64: 1, 64>}, {pipeline_mode = #tpu.pipeline_mode<synchronous>, transform_indices = @transform_9, window_bounds = array<i64: 64, 128>}, {pipeline_mode = #tpu.pipeline_mode<synchronous>, transform_indices = @transform_10, window_bounds = array<i64: 1, 128>}, {pipeline_mode = #tpu.pipeline_mode<synchronous>, transform_indices = @transform_11, window_bounds = array<i64: 128, 896>}, {pipeline_mode = #tpu.pipeline_mode<synchronous>, transform_indices = @transform_12, window_bounds = array<i64: 1, 896>}, {transform_indices = @transform_13, window_bounds = array<i64: 16, 896>}]} {
    %c0 = arith.constant 0 : index
    %c0_0 = arith.constant 0 : index
    %0 = vector.load %arg1[%c0, %c0_0] : memref<16x896xf32, #tpu.memory_space<vmem>>, vector<16x896xf32>
    %c0_1 = arith.constant 0 : index
    %c0_2 = arith.constant 0 : index
    %1 = vector.load %arg2[%c0_1, %c0_2] : memref<896x128xf32, #tpu.memory_space<vmem>>, vector<896x128xf32>
    %cst = arith.constant dense<0.000000e+00> : vector<16x128xf32>
    %2 = tpu.matmul %0, %1, %cst {dimension_numbers = #tpu.dot_dimension_numbers<[1], [0], [0], [1], [0, 0, 1, 1], [], []>} : vector<16x896xf32>, vector<896x128xf32>, vector<16x128xf32> -> vector<16x128xf32>
    %c0_3 = arith.constant 0 : index
    %c0_4 = arith.constant 0 : index
    %3 = vector.load %arg3[%c0_3, %c0_4] : memref<1x128xf32, #tpu.memory_space<vmem>>, vector<1x128xf32>
    %4 = vector.broadcast %3 : vector<1x128xf32> to vector<16x128xf32>
    %5 = arith.addf %2, %4 : vector<16x128xf32>
    %cst_5 = arith.constant 0.000000e+00 : f32
    %6 = vector.broadcast %cst_5 : f32 to vector<16x128xf32>
    %7 = arith.maximumf %5, %6 : vector<16x128xf32>
    %c0_6 = arith.constant 0 : index
    %c0_7 = arith.constant 0 : index
    %8 = vector.load %arg4[%c0_6, %c0_7] : memref<128x64xf32, #tpu.memory_space<vmem>>, vector<128x64xf32>
    %cst_8 = arith.constant dense<0.000000e+00> : vector<16x64xf32>
    %9 = tpu.matmul %7, %8, %cst_8 {dimension_numbers = #tpu.dot_dimension_numbers<[1], [0], [0], [1], [0, 0, 1, 1], [], []>} : vector<16x128xf32>, vector<128x64xf32>, vector<16x64xf32> -> vector<16x64xf32>
    %c0_9 = arith.constant 0 : index
    %c0_10 = arith.constant 0 : index
    %10 = vector.load %arg5[%c0_9, %c0_10] : memref<1x64xf32, #tpu.memory_space<vmem>>, vector<1x64xf32>
    %11 = vector.broadcast %10 : vector<1x64xf32> to vector<16x64xf32>
    %12 = arith.addf %9, %11 : vector<16x64xf32>
    %cst_11 = arith.constant 0.000000e+00 : f32
    %13 = vector.broadcast %cst_11 : f32 to vector<16x64xf32>
    %14 = arith.maximumf %12, %13 : vector<16x64xf32>
    %c0_12 = arith.constant 0 : index
    %c0_13 = arith.constant 0 : index
    %15 = vector.load %arg6[%c0_12, %c0_13] : memref<64x32xf32, #tpu.memory_space<vmem>>, vector<64x32xf32>
    %cst_14 = arith.constant dense<0.000000e+00> : vector<16x32xf32>
    %16 = tpu.matmul %14, %15, %cst_14 {dimension_numbers = #tpu.dot_dimension_numbers<[1], [0], [0], [1], [0, 0, 1, 1], [], []>} : vector<16x64xf32>, vector<64x32xf32>, vector<16x32xf32> -> vector<16x32xf32>
    %c0_15 = arith.constant 0 : index
    %c0_16 = arith.constant 0 : index
    %17 = vector.load %arg7[%c0_15, %c0_16] : memref<1x32xf32, #tpu.memory_space<vmem>>, vector<1x32xf32>
    %18 = vector.broadcast %17 : vector<1x32xf32> to vector<16x32xf32>
    %19 = arith.addf %16, %18 : vector<16x32xf32>
    %c0_17 = arith.constant 0 : index
    %c0_18 = arith.constant 0 : index
    %20 = vector.load %arg8[%c0_17, %c0_18] : memref<32x64xf32, #tpu.memory_space<vmem>>, vector<32x64xf32>
    %cst_19 = arith.constant dense<0.000000e+00> : vector<16x64xf32>
    %21 = tpu.matmul %19, %20, %cst_19 {dimension_numbers = #tpu.dot_dimension_numbers<[1], [0], [0], [1], [0, 0, 1, 1], [], []>} : vector<16x32xf32>, vector<32x64xf32>, vector<16x64xf32> -> vector<16x64xf32>
    %c0_20 = arith.constant 0 : index
    %c0_21 = arith.constant 0 : index
    %22 = vector.load %arg9[%c0_20, %c0_21] : memref<1x64xf32, #tpu.memory_space<vmem>>, vector<1x64xf32>
    %23 = vector.broadcast %22 : vector<1x64xf32> to vector<16x64xf32>
    %24 = arith.addf %21, %23 : vector<16x64xf32>
    %cst_22 = arith.constant 0.000000e+00 : f32
    %25 = vector.broadcast %cst_22 : f32 to vector<16x64xf32>
    %26 = arith.maximumf %24, %25 : vector<16x64xf32>
    %c0_23 = arith.constant 0 : index
    %c0_24 = arith.constant 0 : index
    %27 = vector.load %arg10[%c0_23, %c0_24] : memref<64x128xf32, #tpu.memory_space<vmem>>, vector<64x128xf32>
    %cst_25 = arith.constant dense<0.000000e+00> : vector<16x128xf32>
    %28 = tpu.matmul %26, %27, %cst_25 {dimension_numbers = #tpu.dot_dimension_numbers<[1], [0], [0], [1], [0, 0, 1, 1], [], []>} : vector<16x64xf32>, vector<64x128xf32>, vector<16x128xf32> -> vector<16x128xf32>
    %c0_26 = arith.constant 0 : index
    %c0_27 = arith.constant 0 : index
    %29 = vector.load %arg11[%c0_26, %c0_27] : memref<1x128xf32, #tpu.memory_space<vmem>>, vector<1x128xf32>
    %30 = vector.broadcast %29 : vector<1x128xf32> to vector<16x128xf32>
    %31 = arith.addf %28, %30 : vector<16x128xf32>
    %cst_28 = arith.constant 0.000000e+00 : f32
    %32 = vector.broadcast %cst_28 : f32 to vector<16x128xf32>
    %33 = arith.maximumf %31, %32 : vector<16x128xf32>
    %c0_29 = arith.constant 0 : index
    %c0_30 = arith.constant 0 : index
    %34 = vector.load %arg12[%c0_29, %c0_30] : memref<128x896xf32, #tpu.memory_space<vmem>>, vector<128x896xf32>
    %cst_31 = arith.constant dense<0.000000e+00> : vector<16x896xf32>
    %35 = tpu.matmul %33, %34, %cst_31 {dimension_numbers = #tpu.dot_dimension_numbers<[1], [0], [0], [1], [0, 0, 1, 1], [], []>} : vector<16x128xf32>, vector<128x896xf32>, vector<16x896xf32> -> vector<16x896xf32>
    %c0_32 = arith.constant 0 : index
    %c0_33 = arith.constant 0 : index
    %36 = vector.load %arg13[%c0_32, %c0_33] : memref<1x896xf32, #tpu.memory_space<vmem>>, vector<1x896xf32>
    %37 = vector.broadcast %36 : vector<1x896xf32> to vector<16x896xf32>
    %38 = arith.addf %35, %37 : vector<16x896xf32>
    %39 = arith.negf %38 : vector<16x896xf32>
    %40 = math.exp %39 : vector<16x896xf32>
    %cst_34 = arith.constant 1.000000e+00 : f32
    %41 = vector.broadcast %cst_34 : f32 to vector<16x896xf32>
    %42 = arith.addf %41, %40 : vector<16x896xf32>
    %43 = arith.divf %41, %42 : vector<16x896xf32>
    %c0_35 = arith.constant 0 : index
    %c0_36 = arith.constant 0 : index
    %44 = vector.load %arg14[%c0_35, %c0_36] : memref<16x896xf32, #tpu.memory_space<vmem>>, vector<16x896xf32>
    tpu.vector_store %arg14[%c0_35, %c0_36], %43 {strides = array<i32>} : memref<16x896xf32, #tpu.memory_space<vmem>>, vector<16x896xf32>,
    return
  }
  func.func @transform_0(%arg0: i32) -> (i32, i32) {
    %c0_i32 = arith.constant 0 : i32
    %c0_i32_0 = arith.constant 0 : i32
    return %arg0, %c0_i32 : i32, i32
  }
  func.func @transform_1(%arg0: i32) -> (i32, i32) {
    %c0_i32 = arith.constant 0 : i32
    %c0_i32_0 = arith.constant 0 : i32
    %c0_i32_1 = arith.constant 0 : i32
    return %c0_i32, %c0_i32_0 : i32, i32
  }
  func.func @transform_2(%arg0: i32) -> (i32, i32) {
    %c0_i32 = arith.constant 0 : i32
    %c0_i32_0 = arith.constant 0 : i32
    %c0_i32_1 = arith.constant 0 : i32
    return %c0_i32, %c0_i32_0 : i32, i32
  }
  func.func @transform_3(%arg0: i32) -> (i32, i32) {
    %c0_i32 = arith.constant 0 : i32
    %c0_i32_0 = arith.constant 0 : i32
    %c0_i32_1 = arith.constant 0 : i32
    return %c0_i32, %c0_i32_0 : i32, i32
  }
  func.func @transform_4(%arg0: i32) -> (i32, i32) {
    %c0_i32 = arith.constant 0 : i32
    %c0_i32_0 = arith.constant 0 : i32
    %c0_i32_1 = arith.constant 0 : i32
    return %c0_i32, %c0_i32_0 : i32, i32
  }
  func.func @transform_5(%arg0: i32) -> (i32, i32) {
    %c0_i32 = arith.constant 0 : i32
    %c0_i32_0 = arith.constant 0 : i32
    %c0_i32_1 = arith.constant 0 : i32
    return %c0_i32, %c0_i32_0 : i32, i32
  }
  func.func @transform_6(%arg0: i32) -> (i32, i32) {
    %c0_i32 = arith.constant 0 : i32
    %c0_i32_0 = arith.constant 0 : i32
    %c0_i32_1 = arith.constant 0 : i32
    return %c0_i32, %c0_i32_0 : i32, i32
  }
  func.func @transform_7(%arg0: i32) -> (i32, i32) {
    %c0_i32 = arith.constant 0 : i32
    %c0_i32_0 = arith.constant 0 : i32
    %c0_i32_1 = arith.constant 0 : i32
    return %c0_i32, %c0_i32_0 : i32, i32
  }
  func.func @transform_8(%arg0: i32) -> (i32, i32) {
    %c0_i32 = arith.constant 0 : i32
    %c0_i32_0 = arith.constant 0 : i32
    %c0_i32_1 = arith.constant 0 : i32
    return %c0_i32, %c0_i32_0 : i32, i32
  }
  func.func @transform_9(%arg0: i32) -> (i32, i32) {
    %c0_i32 = arith.constant 0 : i32
    %c0_i32_0 = arith.constant 0 : i32
    %c0_i32_1 = arith.constant 0 : i32
    return %c0_i32, %c0_i32_0 : i32, i32
  }
  func.func @transform_10(%arg0: i32) -> (i32, i32) {
    %c0_i32 = arith.constant 0 : i32
    %c0_i32_0 = arith.constant 0 : i32
    %c0_i32_1 = arith.constant 0 : i32
    return %c0_i32, %c0_i32_0 : i32, i32
  }
  func.func @transform_11(%arg0: i32) -> (i32, i32) {
    %c0_i32 = arith.constant 0 : i32
    %c0_i32_0 = arith.constant 0 : i32
    %c0_i32_1 = arith.constant 0 : i32
    return %c0_i32, %c0_i32_0 : i32, i32
  }
  func.func @transform_12(%arg0: i32) -> (i32, i32) {
    %c0_i32 = arith.constant 0 : i32
    %c0_i32_0 = arith.constant 0 : i32
    %c0_i32_1 = arith.constant 0 : i32
    return %c0_i32, %c0_i32_0 : i32, i32
  }
  func.func @transform_13(%arg0: i32) -> (i32, i32) {
    %c0_i32 = arith.constant 0 : i32
    %c0_i32_0 = arith.constant 0 : i32
    return %arg0, %c0_i32 : i32, i32
  }
}

</mosaic_0001>

<bundles_post_ra>
// kernel: tpu_custom_call.1
= control target key start
LH: loop header
LB: loop body
LE: loop exit
PB: predicated region body
PF: predicated region fallthrough
CT: control target
= control target key end

     0   :  { %18 = vsyncpa [#allocation3], 0  ;;  %s1751_s0 = inlined_call_operand.vmem [shape: f32[16,896], index: 0, kind: input, shape index: {}]   ;;  %s1752_s1 = inlined_call_operand.hbm [shape: f32[896,128], index: 1, kind: input, shape index: {}]   ;;  %s1753_s2 = inlined_call_operand.vmem [shape: f32[1,128], index: 2, kind: input, shape index: {}]   ;;  %s1754_s3 = inlined_call_operand.vmem [shape: f32[128,64], index: 3, kind: input, shape index: {}]   ;;  %s1755_s4 = inlined_call_operand.vmem [shape: f32[1,64], index: 4, kind: input, shape index: {}]   ;;  %s1756_s5 = inlined_call_operand.vmem [shape: f32[64,32], index: 5, kind: input, shape index: {}]   ;;  %s1757_s6 = inlined_call_operand.vmem [shape: f32[1,32], index: 6, kind: input, shape index: {}]   ;;  %s1758_s7 = inlined_call_operand.vmem [shape: f32[32,64], index: 7, kind: input, shape index: {}]   ;;  %s1759_s8 = inlined_call_operand.vmem [shape: f32[1,64], index: 8, kind: input, shape index: {}]   ;;  %s1760_s9 = inlined_call_operand.vmem [shape: f32[64,128], index: 9, kind: input, shape index: {}]   ;;  %s1761_s10 = inlined_call_operand.vmem [shape: f32[1,128], index: 10, kind: input, shape index: {}]   ;;  %s1762_s11 = inlined_call_operand.hbm [shape: f32[128,896], index: 11, kind: input, shape index: {}]   ;;  %s1763_s12 = inlined_call_operand.vmem [shape: f32[1,896], index: 12, kind: input, shape index: {}]   ;;  %s1764_s13 = inlined_call_operand.hbm [shape: f32[16,896], index: 13, kind: output, shape index: {}]  }
   0x1   :  { %19 = vsyncpa [#allocation6], 0 }
   0x2   :  { %20 = vsyncpa [#allocation4], 0  ;;  %s27_s27 = sshll.u32 %s1752_s1, 4  ;;  %s1295_s28 = smov [#allocation2]   ;;  %s28_s27 = int_to_ptr.hbm [resolvable:$true] %s27_s27 }
   0x3   :  { %s29_s29 = sshll.u32 %s1295_s28, 4  ;;  %s58_s15 = sshll.u32 %s1762_s11, 4  ;;  %s30_s29 = int_to_ptr.vmem [resolvable:$true] %s29_s29  ;;  %s59_s15 = int_to_ptr.hbm [resolvable:$true] %s58_s15 }
   0x4   :  { %s1296_s16 = smov 128   ;;  %s1297_s17 = smov 8  }
   0x5   :  { %35 = dma.hbm_to_vmem [thread:$0]  %s28_s27, 14336, %s30_s29, [#allocation3], %s1296_s16, %s1296_s16, %s1297_s17  }
   0x6   :  { %s1298_s18 = smov [#allocation5]   ;;  %s1299_s20 = smov 896  }
   0x7   :  { %s60_s19 = sshll.u32 %s1298_s18, 4  ;;  %s1300_s21 = smov 56   ;;  %s61_s19 = int_to_ptr.vmem [resolvable:$true] %s60_s19 }
   0x8   :  { %66 = dma.hbm_to_vmem [thread:$0]  %s59_s15, 14336, %s61_s19, [#allocation6], %s1299_s20, %s1299_s20, %s1300_s21  }
   0x9   :  { %1289 = dma.done.wait [#allocation3], 14336  }
   0xa   :  { %1290 = vsyncadd [#allocation3], 4294952960 }
   0xb   :  { %1291 = dma.done.wait [#allocation6], 14336  }
   0xc   :  { %1292 = vsyncadd [#allocation6], 4294952960  ;;  %v106_v0 = vld [vmem:[#allocation2 + $0x78] sm:$0xff]  ;;  %v105_v2 = vld [vmem:[#allocation2 + $0x70] sm:$0xff]  ;;  %vm427_vm0 = vcmask 523264   ;;  %vm465_vm1 = vcmask 261120  }
   0xd   :  { %v138_v1 = vld [vmem:[#allocation2 + $0x178] sm:$0xff]  ;;  %207 = vmatpush.msra.mxu0 %v106_v0  ;;  %v137_v4 = vld [vmem:[#allocation2 + $0x170] sm:$0xff]  ;;  %v104_v5 = vld [vmem:[#allocation2 + $0x68] sm:$0xff] }
   0xe   :  { %253 = vmatpush.msra.mxu2 %v138_v1  ;;  %v122_v3 = vld [vmem:[#allocation2 + $0xf8] sm:$0xff]  ;;  %v121_v6 = vld [vmem:[#allocation2 + $0xf0] sm:$0xff]  ;;  %v136_v7 = vld [vmem:[#allocation2 + $0x168] sm:$0xff] }
   0xf   :  { %230 = vmatpush.msra.mxu1 %v122_v3  ;;  %208 = vmatpush.msra.mxu0 %v105_v2  ;;  %v120_v8 = vld [vmem:[#allocation2 + $0xe8] sm:$0xff]  ;;  %v103_v9 = vld [vmem:[#allocation2 + $0x60] sm:$0xff]  ;;  %v102_v12 = vld [vmem:[#allocation2 + $0x58] sm:$0xff] }
  0x10   :  { %254 = vmatpush.msra.mxu2 %v137_v4  ;;  %v135_v10 = vld [vmem:[#allocation2 + $0x160] sm:$0xff]  ;;  %v134_v13 = vld [vmem:[#allocation2 + $0x158] sm:$0xff]  ;;  %v101_v15 = vld [vmem:[#allocation2 + $0x50] sm:$0xff] }
  0x11   :  { %231 = vmatpush.msra.mxu1 %v121_v6  ;;  %209 = vmatpush.msra.mxu0 %v104_v5  ;;  %v119_v11 = vld [vmem:[#allocation2 + $0xe0] sm:$0xff]  ;;  %v118_v14 = vld [vmem:[#allocation2 + $0xd8] sm:$0xff]  ;;  %v133_v16 = vld [vmem:[#allocation2 + $0x150] sm:$0xff] }
  0x12   :  { %255 = vmatpush.msra.mxu2 %v136_v7  ;;  %v154_v17 = vld [vmem:[#allocation2 + $0x1f8] sm:$0xff]  ;;  %v117_v18 = vld [vmem:[#allocation2 + $0xd0] sm:$0xff]  ;;  %v100_v19 = vld [vmem:[#allocation2 + $0x48] sm:$0xff] }
  0x13   :  { %232 = vmatpush.msra.mxu1 %v120_v8  ;;  %210 = vmatpush.msra.mxu0 %v103_v9  ;;  %v132_v20 = vld [vmem:[#allocation2 + $0x148] sm:$0xff]  ;;  %v153_v21 = vld [vmem:[#allocation2 + $0x1f0] sm:$0xff]  ;;  %v99_v24 = vld [vmem:[#allocation2 + $0x40] sm:$0xff] }
  0x14   :  { %256 = vmatpush.msra.mxu2 %v135_v10  ;;  %276 = vmatpush.msra.mxu3 %v154_v17  ;;  %v116_v22 = vld [vmem:[#allocation2 + $0xc8] sm:$0xff]  ;;  %v131_v25 = vld [vmem:[#allocation2 + $0x140] sm:$0xff]  ;;  %v98_v28 = vld [vmem:[#allocation2 + $0x38] sm:$0xff] }
  0x15   :  { %233 = vmatpush.msra.mxu1 %v119_v11  ;;  %211 = vmatpush.msra.mxu0 %v102_v12  ;;  %v152_v23 = vld [vmem:[#allocation2 + $0x1e8] sm:$0xff]  ;;  %v115_v26 = vld [vmem:[#allocation2 + $0xc0] sm:$0xff]  ;;  %v130_v29 = vld [vmem:[#allocation2 + $0x138] sm:$0xff] }
  0x16   :  { %257 = vmatpush.msra.mxu2 %v134_v13  ;;  %277 = vmatpush.msra.mxu3 %v153_v21  ;;  %v151_v27 = vld [vmem:[#allocation2 + $0x1e0] sm:$0xff]  ;;  %v114_v30 = vld [vmem:[#allocation2 + $0xb8] sm:$0xff]  ;;  %v97_v32 = vld [vmem:[#allocation2 + $0x30] sm:$0xff] }
  0x17   :  { %234 = vmatpush.msra.mxu1 %v118_v14  ;;  %212 = vmatpush.msra.mxu0 %v101_v15  ;;  %v150_v31 = vld [vmem:[#allocation2 + $0x1d8] sm:$0xff]  ;;  %v129_v33 = vld [vmem:[#allocation2 + $0x130] sm:$0xff]  ;;  %v96_v36 = vld [vmem:[#allocation2 + $0x28] sm:$0xff] }
  0x18   :  { %258 = vmatpush.msra.mxu2 %v133_v16  ;;  %278 = vmatpush.msra.mxu3 %v152_v23  ;;  %v113_v34 = vld [vmem:[#allocation2 + $0xb0] sm:$0xff]  ;;  %v128_v37 = vld [vmem:[#allocation2 + $0x128] sm:$0xff]  ;;  %v95_v40 = vld [vmem:[#allocation2 + $0x20] sm:$0xff] }
  0x19   :  { %235 = vmatpush.msra.mxu1 %v117_v18  ;;  %213 = vmatpush.msra.mxu0 %v100_v19  ;;  %v149_v35 = vld [vmem:[#allocation2 + $0x1d0] sm:$0xff]  ;;  %v112_v38 = vld [vmem:[#allocation2 + $0xa8] sm:$0xff]  ;;  %v127_v41 = vld [vmem:[#allocation2 + $0x120] sm:$0xff] }
  0x1a   :  { %259 = vmatpush.msra.mxu2 %v132_v20  ;;  %279 = vmatpush.msra.mxu3 %v151_v27  ;;  %v148_v39 = vld [vmem:[#allocation2 + $0x1c8] sm:$0xff]  ;;  %v111_v42 = vld [vmem:[#allocation2 + $0xa0] sm:$0xff]  ;;  %v94_v44 = vld [vmem:[#allocation2 + $0x18] sm:$0xff] }
  0x1b   :  { %236 = vmatpush.msra.mxu1 %v116_v22  ;;  %214 = vmatpush.msra.mxu0 %v99_v24  ;;  %v147_v43 = vld [vmem:[#allocation2 + $0x1c0] sm:$0xff]  ;;  %v126_v45 = vld [vmem:[#allocation2 + $0x118] sm:$0xff]  ;;  %v93_v48 = vld [vmem:[#allocation2 + $0x10] sm:$0xff] }
  0x1c   :  { %260 = vmatpush.msra.mxu2 %v131_v25  ;;  %280 = vmatpush.msra.mxu3 %v150_v31  ;;  %v110_v46 = vld [vmem:[#allocation2 + $0x98] sm:$0xff]  ;;  %v125_v49 = vld [vmem:[#allocation2 + $0x110] sm:$0xff]  ;;  %v92_v52 = vld [vmem:[#allocation2 + $0x8] sm:$0xff] }
  0x1d   :  { %237 = vmatpush.msra.mxu1 %v115_v26  ;;  %215 = vmatpush.msra.mxu0 %v98_v28  ;;  %v146_v47 = vld [vmem:[#allocation2 + $0x1b8] sm:$0xff]  ;;  %v109_v50 = vld [vmem:[#allocation2 + $0x90] sm:$0xff]  ;;  %v124_v53 = vld [vmem:[#allocation2 + $0x108] sm:$0xff] }
  0x1e   :  { %261 = vmatpush.msra.mxu2 %v130_v29  ;;  %281 = vmatpush.msra.mxu3 %v149_v35  ;;  %v145_v51 = vld [vmem:[#allocation2 + $0x1b0] sm:$0xff]  ;;  %v108_v54 = vld [vmem:[#allocation2 + $0x88] sm:$0xff]  ;;  %v91_v56 = vld [vmem:[#allocation2] sm:$0xff] }
  0x1f   :  { %238 = vmatpush.msra.mxu1 %v114_v30  ;;  %216 = vmatpush.msra.mxu0 %v97_v32  ;;  %v144_v55 = vld [vmem:[#allocation2 + $0x1a8] sm:$0xff]  ;;  %v123_v57 = vld [vmem:[#allocation2 + $0x100] sm:$0xff]  ;;  %v170_v58 = vld [vmem:[#allocation2 + $0x278] sm:$0xff] }
  0x20   :  { %262 = vmatpush.msra.mxu2 %v129_v33  ;;  %282 = vmatpush.msra.mxu3 %v148_v39  ;;  %v202_v59 = vld [vmem:[#allocation2 + $0x378] sm:$0xff]  ;;  %v107_v60 = vld [vmem:[#allocation2 + $0x80] sm:$0xff]  ;;  %v169_v62 = vld [vmem:[#allocation2 + $0x270] sm:$0xff] }
  0x21   :  { %239 = vmatpush.msra.mxu1 %v113_v34  ;;  %217 = vmatpush.msra.mxu0 %v96_v36  ;;  %v143_v61 = vld [vmem:[#allocation2 + $0x1a0] sm:$0xff]  ;;  %v186_v63 = vld [vmem:[#allocation2 + $0x2f8] sm:$0xff]  ;;  %v201_v0 = vld [vmem:[#allocation2 + $0x370] sm:$0xff] }
  0x22   :  { %263 = vmatpush.msra.mxu2 %v128_v37  ;;  %283 = vmatpush.msra.mxu3 %v147_v43  ;;  %v142_v1 = vld [vmem:[#allocation2 + $0x198] sm:$0xff]  ;;  %v168_v2 = vld [vmem:[#allocation2 + $0x268] sm:$0xff]  ;;  %v185_v3 = vld [vmem:[#allocation2 + $0x2f0] sm:$0xff] }
  0x23   :  { %240 = vmatpush.msra.mxu1 %v112_v38  ;;  %218 = vmatpush.msra.mxu0 %v95_v40  ;;  %v200_v4 = vld [vmem:[#allocation2 + $0x368] sm:$0xff]  ;;  %v141_v5 = vld [vmem:[#allocation2 + $0x190] sm:$0xff]  ;;  %v167_v6 = vld [vmem:[#allocation2 + $0x260] sm:$0xff] }
  0x24   :  { %264 = vmatpush.msra.mxu2 %v127_v41  ;;  %284 = vmatpush.msra.mxu3 %v146_v47  ;;  %v184_v7 = vld [vmem:[#allocation2 + $0x2e8] sm:$0xff]  ;;  %v199_v8 = vld [vmem:[#allocation2 + $0x360] sm:$0xff]  ;;  %v166_v10 = vld [vmem:[#allocation2 + $0x258] sm:$0xff] }
  0x25   :  { %241 = vmatpush.msra.mxu1 %v111_v42  ;;  %219 = vmatpush.msra.mxu0 %v94_v44  ;;  %v140_v9 = vld [vmem:[#allocation2 + $0x188] sm:$0xff]  ;;  %v183_v11 = vld [vmem:[#allocation2 + $0x2e0] sm:$0xff]  ;;  %v198_v12 = vld [vmem:[#allocation2 + $0x358] sm:$0xff] }
  0x26   :  { %265 = vmatpush.msra.mxu2 %v126_v45  ;;  %285 = vmatpush.msra.mxu3 %v145_v51  ;;  %v77_v13 = vld [vmem:[%s1751_s0] sm:$0xff]  ;;  %v165_v14 = vld [vmem:[#allocation2 + $0x250] sm:$0xff]  ;;  %v182_v15 = vld [vmem:[#allocation2 + $0x2d8] sm:$0xff] }
  0x27   :  { %242 = vmatpush.msra.mxu1 %v110_v46  ;;  %220 = vmatpush.msra.mxu0 %v93_v48  ;;  %v197_v16 = vld [vmem:[#allocation2 + $0x350] sm:$0xff]  ;;  %v164_v17 = vld [vmem:[#allocation2 + $0x248] sm:$0xff]  ;;  %v139_v18 = vld [vmem:[#allocation2 + $0x180] sm:$0xff] }
  0x28   :  { %266 = vmatpush.msra.mxu2 %v125_v49  ;;  %286 = vmatpush.msra.mxu3 %v144_v55  ;;  %v181_v19 = vld [vmem:[#allocation2 + $0x2d0] sm:$0xff]  ;;  %v196_v20 = vld [vmem:[#allocation2 + $0x348] sm:$0xff]  ;;  %v163_v21 = vld [vmem:[#allocation2 + $0x240] sm:$0xff] }
  0x29   :  { %243 = vmatpush.msra.mxu1 %v109_v50  ;;  %221 = vmatpush.msra.mxu0 %v92_v52  ;;  %v180_v22 = vld [vmem:[#allocation2 + $0x2c8] sm:$0xff]  ;;  %v195_v24 = vld [vmem:[#allocation2 + $0x340] sm:$0xff]  ;;  %v80_v25 = vld [vmem:[%s1751_s0 + $0x18] sm:$0xff] }
  0x2a   :  { %267 = vmatpush.msra.mxu2 %v124_v53  ;;  %287 = vmatpush.msra.mxu3 %v143_v61  ;;  %v78_v23 = vld [vmem:[%s1751_s0 + $0x8] sm:$0xff]  ;;  %v79_v26 = vld [vmem:[%s1751_s0 + $0x10] sm:$0xff]  ;;  %v162_v27 = vld [vmem:[#allocation2 + $0x238] sm:$0xff] }
  0x2b   :  { %244 = vmatpush.msra.mxu1 %v108_v54  ;;  %222 = vmatpush.msra.mxu0 %v91_v56  ;;  %v179_v28 = vld [vmem:[#allocation2 + $0x2c0] sm:$0xff]  ;;  %v194_v29 = vld [vmem:[#allocation2 + $0x338] sm:$0xff]  ;;  %v161_v30 = vld [vmem:[#allocation2 + $0x230] sm:$0xff] }
  0x2c   :  { %268 = vmatpush.msra.mxu2 %v123_v57  ;;  %288 = vmatpush.msra.mxu3 %v142_v1  ;;  %v385_v31 = vld [vmem:[%s1754_s3 + $0x78] sm:$0xff]  ;;  %v193_v33 = vld [vmem:[#allocation2 + $0x330] sm:$0xff]  ;;  %v160_v34 = vld [vmem:[#allocation2 + $0x228] sm:$0xff] }
  0x2d   :  { %299 = vmatpush.msrb.mxu0 %v170_v58  ;;  %245 = vmatpush.msra.mxu1 %v107_v60  ;;  %v178_v32 = vld [vmem:[#allocation2 + $0x2b8] sm:$0xff]  ;;  %v384_v35 = vld [vmem:[%s1754_s3 + $0x70] sm:$0xff]  ;;  %v192_v37 = vld [vmem:[#allocation2 + $0x328] sm:$0xff] }
  0x2e   :  { %345 = vmatpush.msrb.mxu2 %v202_v59  ;;  %289 = vmatpush.msra.mxu3 %v141_v5  ;;  %v177_v36 = vld [vmem:[#allocation2 + $0x2b0] sm:$0xff]  ;;  %v159_v38 = vld [vmem:[#allocation2 + $0x220] sm:$0xff]  ;;  %v176_v40 = vld [vmem:[#allocation2 + $0x2a8] sm:$0xff] }
  0x2f   :  { %300 = vmatpush.msrb.mxu0 %v169_v62  ;;  %322 = vmatpush.msrb.mxu1 %v186_v63  ;;  %v85_v39 = vld [vmem:[%s1751_s0 + $0x40] sm:$0xff]  ;;  %v84_v42 = vld [vmem:[%s1751_s0 + $0x38] sm:$0xff]  ;;  %v86_v43 = vld [vmem:[%s1751_s0 + $0x48] sm:$0xff] }
  0x30   :  { %346 = vmatpush.msrb.mxu2 %v201_v0  ;;  %290 = vmatpush.msra.mxu3 %v140_v9  ;;  %v191_v41 = vld [vmem:[#allocation2 + $0x320] sm:$0xff]  ;;  %v158_v44 = vld [vmem:[#allocation2 + $0x218] sm:$0xff]  ;;  %v87_v47 = vld [vmem:[%s1751_s0 + $0x50] sm:$0xff] }
  0x31   :  { %301 = vmatpush.msrb.mxu0 %v168_v2  ;;  %323 = vmatpush.msrb.mxu1 %v185_v3  ;;  %v175_v45 = vld [vmem:[#allocation2 + $0x2a0] sm:$0xff]  ;;  %v190_v46 = vld [vmem:[#allocation2 + $0x318] sm:$0xff]  ;;  %v157_v48 = vld [vmem:[#allocation2 + $0x210] sm:$0xff] }
  0x32   :  { %347 = vmatpush.msrb.mxu2 %v200_v4  ;;  %223 = vmatmul.f32.vlgmr.msra.gmra.mxu0 %v77_v13  ;;  %v174_v49 = vld [vmem:[#allocation2 + $0x298] sm:$0xff]  ;;  %v189_v50 = vld [vmem:[#allocation2 + $0x310] sm:$0xff]  ;;  %v156_v51 = vld [vmem:[#allocation2 + $0x208] sm:$0xff] }
  0x33   :  { %302 = vmatpush.msrb.mxu0 %v167_v6  ;;  %324 = vmatpush.msrb.mxu1 %v184_v7  ;;  %v173_v52 = vld [vmem:[#allocation2 + $0x290] sm:$0xff]  ;;  %v188_v53 = vld [vmem:[#allocation2 + $0x308] sm:$0xff]  ;;  %v155_v54 = vld [vmem:[#allocation2 + $0x200] sm:$0xff] }
  0x34   :  { %348 = vmatpush.msrb.mxu2 %v199_v8  ;;  %291 = vmatpush.msra.mxu3 %v139_v18  ;;  %v172_v55 = vld [vmem:[#allocation2 + $0x288] sm:$0xff]  ;;  %v187_v56 = vld [vmem:[#allocation2 + $0x300] sm:$0xff]  ;;  %v83_v58 = vld [vmem:[%s1751_s0 + $0x30] sm:$0xff] }
  0x35   :  { %303 = vmatpush.msrb.mxu0 %v166_v10  ;;  %325 = vmatpush.msrb.mxu1 %v183_v11  ;;  %v81_v57 = vld [vmem:[%s1751_s0 + $0x20] sm:$0xff]  ;;  %v82_v60 = vld [vmem:[%s1751_s0 + $0x28] sm:$0xff]  ;;  %v88_v61 = vld [vmem:[%s1751_s0 + $0x58] sm:$0xff] }
  0x36   :  { %349 = vmatpush.msrb.mxu2 %v198_v12  ;;  %246 = vmatmul.f32.vlgmr.msra.gmra.mxu1 %v78_v23  ;;  %v171_v59 = vld [vmem:[#allocation2 + $0x280] sm:$0xff]  ;;  %v90_v62 = vld [vmem:[%s1751_s0 + $0x68] sm:$0xff]  ;;  %v381_v2 = vld [vmem:[%s1754_s3 + $0x58] sm:$0xff] }
  0x37   :  { %304 = vmatpush.msrb.mxu0 %v165_v14  ;;  %326 = vmatpush.msrb.mxu1 %v182_v15  ;;  %v89_v63 = vld [vmem:[%s1751_s0 + $0x60] sm:$0xff]  ;;  %v383_v0 = vld [vmem:[%s1754_s3 + $0x68] sm:$0xff]  ;;  %v380_v3 = vld [vmem:[%s1754_s3 + $0x50] sm:$0xff] }
  0x38   :  { %350 = vmatpush.msrb.mxu2 %v197_v16  ;;  %292 = vmatmul.f32.vlgmr.msra.gmra.mxu3 %v80_v25  ;;  %v382_v1 = vld [vmem:[%s1754_s3 + $0x60] sm:$0xff]  ;;  %v379_v4 = vld [vmem:[%s1754_s3 + $0x48] sm:$0xff]  ;;  %v377_v6 = vld [vmem:[%s1754_s3 + $0x38] sm:$0xff] }
  0x39   :  { %305 = vmatpush.msrb.mxu0 %v164_v17  ;;  %327 = vmatpush.msrb.mxu1 %v181_v19  ;;  %v378_v5 = vld [vmem:[%s1754_s3 + $0x40] sm:$0xff]  ;;  %v376_v7 = vld [vmem:[%s1754_s3 + $0x30] sm:$0xff]  ;;  %v375_v8 = vld [vmem:[%s1754_s3 + $0x28] sm:$0xff] }
  0x3a   :  { %351 = vmatpush.msrb.mxu2 %v196_v20  ;;  %390 = vmatpush.msrb.mxu3 %v385_v31  ;;  %v374_v9 = vld [vmem:[%s1754_s3 + $0x20] sm:$0xff]  ;;  %v373_v10 = vld [vmem:[%s1754_s3 + $0x18] sm:$0xff]  ;;  %v372_v11 = vld [vmem:[%s1754_s3 + $0x10] sm:$0xff] }
  0x3b   :  { %306 = vmatpush.msrb.mxu0 %v163_v21  ;;  %328 = vmatpush.msrb.mxu1 %v180_v22  ;;  %v371_v12 = vld [vmem:[%s1754_s3 + $0x8] sm:$0xff]  ;;  %v370_v13 = vld [vmem:[%s1754_s3] sm:$0xff]  ;;  %v422_v18 = vld [vmem:[%s1756_s5 + $0x38] sm:$0xff]  ;;  %s1115_s3 = sshll.u32 %s1764_s13, 4  ;;  %s1116_s3 = int_to_ptr.hbm [resolvable:$true] %s1115_s3 }
  0x3c   :  { %352 = vmatpush.msrb.mxu2 %v195_v24  ;;  %391 = vmatpush.msrb.mxu3 %v384_v35  ;;  %v1156_v16 = vld [vmem:[%s1753_s2] ss:$0 sm:$0xff]  ;;  %v421_v19 = vld [vmem:[%s1756_s5 + $0x30] sm:$0xff]  ;;  %v420_v21 = vld [vmem:[%s1756_s5 + $0x28] sm:$0xff] }
  0x3d   :  { %269 = vmatmul.f32.vlgmr.msra.gmra.mxu2 %v79_v26  ;;  %307 = vmatpush.msrb.mxu0 %v162_v27  ;;  %v419_v25 = vld [vmem:[%s1756_s5 + $0x20] sm:$0xff]  ;;  %v418_v26 = vld [vmem:[%s1756_s5 + $0x18] sm:$0xff] }
  0x3e   :  { %329 = vmatpush.msrb.mxu1 %v179_v28  ;;  %353 = vmatpush.msrb.mxu2 %v194_v29 }
  0x3f   :  { %308 = vmatpush.msrb.mxu0 %v161_v30  ;;  %249 = vmatmul.f32.gmra.mxu1 %v85_v39  ;;  %v417_v30 = vld [vmem:[%s1756_s5 + $0x10] sm:$0xff] }
  0x40   :  { %330 = vmatpush.msrb.mxu1 %v178_v32  ;;  %354 = vmatpush.msrb.mxu2 %v193_v33 }
  0x41   :  { %309 = vmatpush.msrb.mxu0 %v160_v34  ;;  %295 = vmatmul.f32.gmra.mxu3 %v87_v47 }
  0x42   :  { %331 = vmatpush.msrb.mxu1 %v177_v36  ;;  %355 = vmatpush.msrb.mxu2 %v192_v37 }
  0x43   :  { %310 = vmatpush.msrb.mxu0 %v159_v38  ;;  %392 = vmatpush.msrb.mxu3 %v383_v0  ;;  %v504_v0 = vld [vmem:[%s1760_s9 + $0x38] sm:$0xff] }
  0x44   :  { %332 = vmatpush.msrb.mxu1 %v176_v40  ;;  %356 = vmatpush.msrb.mxu2 %v191_v41 }
  0x45   :  { %226 = vmatmul.f32.gmra.mxu0 %v84_v42  ;;  %272 = vmatmul.f32.gmra.mxu2 %v86_v43 }
  0x46   :  { %311 = vmatpush.msrb.mxu0 %v158_v44  ;;  %333 = vmatpush.msrb.mxu1 %v175_v45 }
  0x47   :  { %357 = vmatpush.msrb.mxu2 %v190_v46  ;;  %393 = vmatpush.msrb.mxu3 %v382_v1  ;;  %v503_v1 = vld [vmem:[%s1760_s9 + $0x30] sm:$0xff] }
  0x48   :  { %312 = vmatpush.msrb.mxu0 %v157_v48  ;;  %334 = vmatpush.msrb.mxu1 %v174_v49 }
  0x49   :  { %358 = vmatpush.msrb.mxu2 %v189_v50  ;;  %394 = vmatpush.msrb.mxu3 %v381_v2  ;;  %v502_v2 = vld [vmem:[%s1760_s9 + $0x28] sm:$0xff] }
  0x4a   :  { %313 = vmatpush.msrb.mxu0 %v156_v51  ;;  %335 = vmatpush.msrb.mxu1 %v173_v52  ;;  %v416_v51 = vld [vmem:[%s1756_s5 + $0x8] sm:$0xff]  ;;  %v415_v52 = vld [vmem:[%s1756_s5] sm:$0xff] }
  0x4b   :  { %359 = vmatpush.msrb.mxu2 %v188_v53  ;;  %395 = vmatpush.msrb.mxu3 %v380_v3  ;;  %v460_v53 = vld [vmem:[%s1758_s7 + $0x18] sm:$0xff]  ;;  %v501_v3 = vld [vmem:[%s1760_s9 + $0x20] sm:$0xff] }
  0x4c   :  { %314 = vmatpush.msrb.mxu0 %v155_v54  ;;  %336 = vmatpush.msrb.mxu1 %v172_v55  ;;  %v459_v54 = vld [vmem:[%s1758_s7 + $0x10] sm:$0xff]  ;;  %v458_v55 = vld [vmem:[%s1758_s7 + $0x8] sm:$0xff] }
  0x4d   :  { %360 = vmatpush.msrb.mxu2 %v187_v56  ;;  %315 = vmatmul.f32.vlgmr.msrb.gmra.mxu0 %v81_v57  ;;  %v457_v56 = vld [vmem:[%s1758_s7] sm:$0xff] }
  0x4e   :  { %361 = vmatmul.f32.vlgmr.msrb.gmra.mxu2 %v83_v58  ;;  %337 = vmatpush.msrb.mxu1 %v171_v59  ;;  %v1157_v57 = vld [vmem:[%s1755_s4] ss:$0 sm:$0xff] }
  0x4f   :  { %338 = vmatmul.f32.vlgmr.msrb.gmra.mxu1 %v82_v60  ;;  %396 = vmatpush.msrb.mxu3 %v379_v4  ;;  %v500_v4 = vld [vmem:[%s1760_s9 + $0x18] sm:$0xff] }
  0x50   :  { %442 = vmatpush.msra.mxu2 %v422_v18  ;;  %484 = vmatpush.msra.mxu1 %v460_v53  ;;  %v640_v18 = vld [vmem:[#allocation5 + $0x320] sm:$0xff]  ;;  %v577_v53 = vld [vmem:[#allocation5 + $0x128] sm:$0xff] }
  0x51   :  { %397 = vmatpush.msrb.mxu3 %v378_v5  ;;  %v499_v5 = vld [vmem:[%s1760_s9 + $0x10] sm:$0xff] }
  0x52   :  { %443 = vmatpush.msra.mxu2 %v421_v19  ;;  %485 = vmatpush.msra.mxu1 %v459_v54  ;;  %v631_v19 = vld [vmem:[#allocation5 + $0x2d8] sm:$0xff]  ;;  %v606_v54 = vld [vmem:[#allocation5 + $0x210] sm:$0xff] }
  0x53   :  { %398 = vmatpush.msrb.mxu3 %v377_v6  ;;  %v1158_v6 = vld [vmem:[%s1757_s6] ss:$0 sm:$0xff] }
  0x54   :  { %444 = vmatpush.msra.mxu2 %v420_v21  ;;  %486 = vmatpush.msra.mxu1 %v458_v55  ;;  %v633_v21 = vld [vmem:[#allocation5 + $0x2e8] sm:$0xff] }
  0x55   :  { %318 = vmatmul.f32.gmra.mxu0 %v88_v61  ;;  %399 = vmatpush.msrb.mxu3 %v376_v7 }
  0x56   :  { %364 = vmatmul.f32.gmra.mxu2 %v90_v62  ;;  %487 = vmatpush.msra.mxu1 %v457_v56  ;;  %v568_v56 = vld [vmem:[#allocation5 + $0xe0] sm:$0xff] }
  0x57   :  { %341 = vmatmul.f32.gmra.mxu1 %v89_v63  ;;  %400 = vmatpush.msrb.mxu3 %v375_v8 }
  0x58   :  { %445 = vmatpush.msra.mxu2 %v419_v25  ;;  %v617_v25 = vld [vmem:[#allocation5 + $0x268] sm:$0xff] }
  0x59   :  { %401 = vmatpush.msrb.mxu3 %v374_v9 }
  0x5a   :  { %446 = vmatpush.msra.mxu2 %v418_v26  ;;  %v618_v26 = vld [vmem:[#allocation5 + $0x270] sm:$0xff] }
  0x5b   :  { %402 = vmatpush.msrb.mxu3 %v373_v10 }
  0x5c   :  { %447 = vmatpush.msra.mxu2 %v417_v30  ;;  %v648_v30 = vld [vmem:[#allocation5 + $0x360] sm:$0xff] }
  0x5d   :  { %403 = vmatpush.msrb.mxu3 %v372_v11  ;;  %v498_v11 = vld [vmem:[%s1760_s9 + $0x8] sm:$0xff] }
  0x5e   :  { %448 = vmatpush.msra.mxu2 %v416_v51  ;;  %v576_v51 = vld [vmem:[#allocation5 + $0x120] sm:$0xff] }
  0x5f   :  { %404 = vmatpush.msrb.mxu3 %v371_v12  ;;  %v497_v12 = vld [vmem:[%s1760_s9] sm:$0xff] }
  0x60   :  { %449 = vmatpush.msra.mxu2 %v415_v52 }
  0x61   :  { %405 = vmatpush.msrb.mxu3 %v370_v13  ;;  %v645_v13 = vld [vmem:[#allocation5 + $0x348] sm:$0xff] }
  0x62   :  { %523 = vmatpush.msrb.mxu2 %v504_v0  ;;  %v554_v0 = vld [vmem:[#allocation5 + $0x70] sm:$0xff] }
  0x63   :  { %668 = vmatpush.msra.mxu3 %v645_v13 }
  0x64   :  { %524 = vmatpush.msrb.mxu2 %v503_v1  ;;  %v555_v1 = vld [vmem:[#allocation5 + $0x78] sm:$0xff] }
  0x66   :  { %525 = vmatpush.msrb.mxu2 %v502_v2  ;;  %v556_v2 = vld [vmem:[#allocation5 + $0x80] sm:$0xff] }
  0x68   :  { %526 = vmatpush.msrb.mxu2 %v501_v3  ;;  %v592_v3 = vld [vmem:[#allocation5 + $0x1a0] sm:$0xff] }
  0x6a   :  { %527 = vmatpush.msrb.mxu2 %v500_v4  ;;  %v547_v4 = vld [vmem:[#allocation5 + $0x38] sm:$0xff] }
  0x6c   :  { %528 = vmatpush.msrb.mxu2 %v499_v5  ;;  %v548_v5 = vld [vmem:[#allocation5 + $0x40] sm:$0xff] }
  0x6e   :  { %529 = vmatpush.msrb.mxu2 %v498_v11  ;;  %v541_v11 = vld [vmem:[#allocation5 + $0x8] sm:$0xff] }
  0x70   :  { %530 = vmatpush.msrb.mxu2 %v497_v12  ;;  %v542_v12 = vld [vmem:[#allocation5 + $0x10] sm:$0xff] }
  0xaf   :  { %v224_v14 = vpop.f32.mrf.mxu0 }
  0xb0   :  { %v225_v17 = vadd.f32 %v1156_v16, %v224_v14  ;;  %v646_v14 = vld [vmem:[#allocation5 + $0x350] sm:$0xff] }
  0xb1   :  { %691 = vmatpush.msra.mxu0 %v646_v14  ;;  %v649_v14 = vld [vmem:[#allocation5 + $0x368] sm:$0xff] }
  0xb3   :  { %v247_v15 = vpop.f32.mrf.mxu1 }
  0xb4   :  { %v248_v22 = vadd.f32 %v247_v15, %v225_v17  ;;  %v647_v15 = vld [vmem:[#allocation5 + $0x358] sm:$0xff] }
  0xb5   :  { %v639_v17 = vld [vmem:[#allocation5 + $0x318] sm:$0xff]  ;;  %714 = vmatpush.msrb.mxu1 %v647_v15  ;;  %v650_v15 = vld [vmem:[#allocation5 + $0x370] sm:$0xff] }
  0xb6   :  { %692 = vmatpush.msra.mxu0 %v639_v17  ;;  %v578_v17 = vld [vmem:[#allocation5 + $0x130] sm:$0xff] }
  0xb7   :  { %715 = vmatpush.msrb.mxu1 %v640_v18  ;;  %v642_v18 = vld [vmem:[#allocation5 + $0x330] sm:$0xff] }
  0xb9   :  { %716 = vmatpush.msrb.mxu1 %v633_v21  ;;  %v571_v21 = vld [vmem:[#allocation5 + $0xf8] sm:$0xff] }
  0xbb   :  { %v293_v27 = vpop.f32.mrf.mxu3 }
  0xbc   :  { %v250_v24 = vpop.f32.mrf.mxu1 }
  0xc0   :  { %v270_v20 = vpop.f32.mrf.mxu2 }
  0xc1   :  { %v271_v28 = vadd.f32 %v270_v20, %v248_v22  ;;  %v632_v20 = vld [vmem:[#allocation5 + $0x2e0] sm:$0xff] }
  0xc2   :  { %v227_v23 = vpop.f32.mrf.mxu0  ;;  %v624_v22 = vld [vmem:[#allocation5 + $0x2a0] sm:$0xff]  ;;  %693 = vmatpush.msra.mxu0 %v632_v20 }
  0xc3   :  { %v228_v29 = vadd.f32 %v1156_v16, %v227_v23  ;;  %v294_v32 = vadd.f32 %v293_v27, %v271_v28  ;;  %v638_v16 = vld [vmem:[#allocation5 + $0x310] sm:$0xff]  ;;  %v625_v23 = vld [vmem:[#allocation5 + $0x2a8] sm:$0xff]  ;;  %v619_v27 = vld [vmem:[#allocation5 + $0x278] sm:$0xff] }
  0xc4   :  { %v296_v38 = vpop.f32.mrf.mxu3  ;;  %669 = vmatpush.msra.mxu3 %v638_v16  ;;  %694 = vmatpush.msra.mxu0 %v625_v23  ;;  %v610_v28 = vld [vmem:[#allocation5 + $0x230] sm:$0xff]  ;;  %v651_v16 = vld [vmem:[#allocation5 + $0x378] sm:$0xff]  ;;  %v644_v20 = vld [vmem:[#allocation5 + $0x340] sm:$0xff] }
  0xc5   :  { %v251_v33 = vadd.f32 %v250_v24, %v228_v29  ;;  %v626_v24 = vld [vmem:[#allocation5 + $0x2b0] sm:$0xff]  ;;  %v611_v29 = vld [vmem:[#allocation5 + $0x238] sm:$0xff]  ;;  %v636_v23 = vld [vmem:[#allocation5 + $0x300] sm:$0xff] }
  0xc6   :  { %670 = vmatpush.msra.mxu3 %v631_v19  ;;  %717 = vmatpush.msrb.mxu1 %v626_v24  ;;  %v643_v19 = vld [vmem:[#allocation5 + $0x338] sm:$0xff]  ;;  %v637_v24 = vld [vmem:[#allocation5 + $0x308] sm:$0xff] }
  0xc7   :  { %695 = vmatpush.msra.mxu0 %v618_v26  ;;  %v628_v26 = vld [vmem:[#allocation5 + $0x2c0] sm:$0xff] }
  0xc8   :  { %v273_v31 = vpop.f32.mrf.mxu2  ;;  %671 = vmatpush.msra.mxu3 %v624_v22  ;;  %718 = vmatpush.msrb.mxu1 %v619_v27  ;;  %v635_v22 = vld [vmem:[#allocation5 + $0x2f8] sm:$0xff]  ;;  %v629_v27 = vld [vmem:[#allocation5 + $0x2c8] sm:$0xff] }
  0xc9   :  { %v274_v37 = vadd.f32 %v273_v31, %v251_v33  ;;  %v612_v31 = vld [vmem:[#allocation5 + $0x240] sm:$0xff]  ;;  %v603_v33 = vld [vmem:[#allocation5 + $0x1f8] sm:$0xff]  ;;  %696 = vmatpush.msra.mxu0 %v611_v29  ;;  %v621_v29 = vld [vmem:[#allocation5 + $0x288] sm:$0xff] }
  0xca   :  { %v316_v34 = vpop.f32.mrf.mxu0  ;;  %672 = vmatpush.msra.mxu3 %v617_v25  ;;  %719 = vmatpush.msrb.mxu1 %v612_v31  ;;  %v564_v25 = vld [vmem:[#allocation5 + $0xc0] sm:$0xff]  ;;  %v623_v31 = vld [vmem:[#allocation5 + $0x298] sm:$0xff] }
  0xcb   :  { %v317_v35 = vadd.f32 %v316_v34, %v294_v32  ;;  %v297_v41 = vadd.f32 %v296_v38, %v274_v37  ;;  %v641_v32 = vld [vmem:[#allocation5 + $0x328] sm:$0xff]  ;;  %v604_v34 = vld [vmem:[#allocation5 + $0x200] sm:$0xff] }
  0xcc   :  { %v339_v36 = vpop.f32.mrf.mxu1  ;;  %673 = vmatpush.msra.mxu3 %v610_v28  ;;  %v596_v37 = vld [vmem:[#allocation5 + $0x1c0] sm:$0xff]  ;;  %v597_v38 = vld [vmem:[#allocation5 + $0x1c8] sm:$0xff]  ;;  %697 = vmatpush.msra.mxu0 %v604_v34  ;;  %v630_v28 = vld [vmem:[#allocation5 + $0x2d0] sm:$0xff] }
  0xcd   :  { %v340_v39 = vadd.f32 %v339_v36, %v317_v35  ;;  %v605_v35 = vld [vmem:[#allocation5 + $0x208] sm:$0xff]  ;;  %v634_v36 = vld [vmem:[#allocation5 + $0x2f0] sm:$0xff]  ;;  %v615_v34 = vld [vmem:[#allocation5 + $0x258] sm:$0xff] }
  0xce   :  { %674 = vmatpush.msra.mxu3 %v603_v33  ;;  %720 = vmatpush.msrb.mxu1 %v605_v35  ;;  %v614_v33 = vld [vmem:[#allocation5 + $0x250] sm:$0xff]  ;;  %v616_v35 = vld [vmem:[#allocation5 + $0x260] sm:$0xff] }
  0xcf   :  { %698 = vmatpush.msra.mxu0 %v597_v38  ;;  %v608_v38 = vld [vmem:[#allocation5 + $0x220] sm:$0xff] }
  0xd0   :  { %675 = vmatpush.msra.mxu3 %v596_v37  ;;  %v607_v37 = vld [vmem:[#allocation5 + $0x218] sm:$0xff] }
  0xd1   :  { %v362_v40 = vpop.f32.mrf.mxu2 }
  0xd2   :  { %v363_v42 = vadd.f32 %v362_v40, %v340_v39  ;;  %v319_v43 = vpop.f32.mrf.mxu0  ;;  %v598_v39 = vld [vmem:[#allocation5 + $0x1d0] sm:$0xff]  ;;  %v627_v40 = vld [vmem:[#allocation5 + $0x2b8] sm:$0xff] }
  0xd3   :  { %v320_v45 = vadd.f32 %v319_v43, %v297_v41  ;;  %v589_v41 = vld [vmem:[#allocation5 + $0x188] sm:$0xff]  ;;  %v591_v43 = vld [vmem:[#allocation5 + $0x198] sm:$0xff]  ;;  %721 = vmatpush.msrb.mxu1 %v598_v39 }
  0xd4   :  { %v368_v44 = vmax.f32 %v363_v42, 0.0  ;;  %v342_v46 = vpop.f32.mrf.mxu1  ;;  %v590_v42 = vld [vmem:[#allocation5 + $0x190] sm:$0xff]  ;;  %676 = vmatpush.msra.mxu3 %v589_v41  ;;  %v609_v39 = vld [vmem:[#allocation5 + $0x228] sm:$0xff]  ;;  %v600_v41 = vld [vmem:[#allocation5 + $0x1e0] sm:$0xff] }
  0xd5   :  { %v343_v47 = vadd.f32 %v342_v46, %v320_v45  ;;  %v1159_v45 = vld [vmem:[%s1759_s8] ss:$0 sm:$0xff]  ;;  %v582_v46 = vld [vmem:[#allocation5 + $0x150] sm:$0xff]  ;;  %699 = vmatpush.msra.mxu0 %v590_v42  ;;  %722 = vmatpush.msrb.mxu1 %v591_v43  ;;  %v601_v42 = vld [vmem:[#allocation5 + $0x1e8] sm:$0xff] }
  0xd6   :  { %406 = vmatmul.f32.vlgmr.msrb.gmra.mxu3 %v368_v44  ;;  %v620_v44 = vld [vmem:[#allocation5 + $0x280] sm:$0xff]  ;;  %v602_v43 = vld [vmem:[#allocation5 + $0x1f0] sm:$0xff] }
  0xd7   :  { %677 = vmatpush.msra.mxu3 %v582_v46  ;;  %v595_v46 = vld [vmem:[#allocation5 + $0x1b8] sm:$0xff] }
  0xd9   :  { %v365_v48 = vpop.f32.mrf.mxu2 }
  0xda   :  { %v366_v49 = vadd.f32 %v365_v48, %v343_v47  ;;  %v583_v47 = vld [vmem:[#allocation5 + $0x158] sm:$0xff]  ;;  %v584_v48 = vld [vmem:[#allocation5 + $0x160] sm:$0xff] }
  0xdb   :  { %700 = vmatpush.msra.mxu0 %v583_v47  ;;  %723 = vmatpush.msrb.mxu1 %v584_v48  ;;  %v586_v47 = vld [vmem:[#allocation5 + $0x170] sm:$0xff]  ;;  %v587_v48 = vld [vmem:[#allocation5 + $0x178] sm:$0xff] }
  0xdc   :  { %v369_v50 = vmax.f32 %v366_v49, 0.0  ;;  %v613_v49 = vld [vmem:[#allocation5 + $0x248] sm:$0xff] }
  0xdd   :  { %701 = vmatpush.msra.mxu0 %v576_v51  ;;  %724 = vmatpush.msrb.mxu1 %v577_v53  ;;  %v580_v51 = vld [vmem:[#allocation5 + $0x140] sm:$0xff] }
  0xde   :  { %409 = vmatmul.f32.gmra.mxu3 %v369_v50  ;;  %v575_v50 = vld [vmem:[#allocation5 + $0x118] sm:$0xff]  ;;  %v572_v53 = vld [vmem:[#allocation5 + $0x100] sm:$0xff] }
  0xdf   :  { %678 = vmatpush.msra.mxu3 %v575_v50  ;;  %v579_v50 = vld [vmem:[#allocation5 + $0x138] sm:$0xff] }
  0xe1   :  { %679 = vmatpush.msra.mxu3 %v568_v56  ;;  %v565_v56 = vld [vmem:[#allocation5 + $0xc8] sm:$0xff] }
 0x159   :  { %v407_v58 = vpop.f32.mrf.mxu3 }
 0x15a   :  { %v408_v59 = vadd.f32 %v1157_v57, %v407_v58  ;;  %v570_v58 = vld [vmem:[#allocation5 + $0xf0] sm:$0xff] }
 0x15b   :  { %725 = vmatpush.msrb.mxu1 %v570_v58  ;;  %v567_v58 = vld [vmem:[#allocation5 + $0xd8] sm:$0xff] }
 0x15c   :  { %v413_v60 = vmax.f32 %v408_v59, 0.0 }
 0x15e   :  { %1129 = vmatmul.msk.f32.vlgmr.msra.gmra.mxu2 %vm427_vm0, %v413_v60  ;;  %v561_v60 = vld [vmem:[#allocation5 + $0xa8] sm:$0xff] }
 0x15f   :  { %737 = vmatpush.msra.mxu2 %v648_v30  ;;  %680 = vmatpush.msra.mxu3 %v561_v60  ;;  %v622_v30 = vld [vmem:[#allocation5 + $0x290] sm:$0xff]  ;;  %v559_v60 = vld [vmem:[#allocation5 + $0x98] sm:$0xff] }
 0x161   :  { %v410_v61 = vpop.f32.mrf.mxu3  ;;  %738 = vmatpush.msra.mxu2 %v641_v32  ;;  %681 = vmatpush.msra.mxu3 %v554_v0  ;;  %v557_v32 = vld [vmem:[#allocation5 + $0x88] sm:$0xff] }
 0x162   :  { %v411_v62 = vadd.f32 %v1157_v57, %v410_v61  ;;  %v569_v57 = vld [vmem:[#allocation5 + $0xe8] sm:$0xff]  ;;  %v562_v61 = vld [vmem:[#allocation5 + $0xb0] sm:$0xff] }
 0x163   :  { %739 = vmatpush.msra.mxu2 %v634_v36  ;;  %702 = vmatpush.msra.mxu0 %v569_v57  ;;  %v550_v36 = vld [vmem:[#allocation5 + $0x50] sm:$0xff]  ;;  %v553_v0 = vld [vmem:[#allocation5 + $0x68] sm:$0xff] }
 0x164   :  { %v414_v63 = vmax.f32 %v411_v62, 0.0  ;;  %v563_v62 = vld [vmem:[#allocation5 + $0xb8] sm:$0xff]  ;;  %682 = vmatpush.msra.mxu3 %v547_v4  ;;  %v566_v57 = vld [vmem:[#allocation5 + $0xd0] sm:$0xff]  ;;  %v1160_v4 = vld [vmem:[%s1761_s10] ss:$0 sm:$0xff] }
 0x165   :  { %740 = vmatpush.msra.mxu2 %v627_v40  ;;  %703 = vmatpush.msra.mxu0 %v562_v61  ;;  %v543_v40 = vld [vmem:[#allocation5 + $0x18] sm:$0xff]  ;;  %v560_v61 = vld [vmem:[#allocation5 + $0xa0] sm:$0xff] }
 0x166   :  { %1130 = vmatmul.msk.f32.gmra.mxu2 %vm427_vm0, %v414_v63  ;;  %v599_v63 = vld [vmem:[#allocation5 + $0x1d8] sm:$0xff]  ;;  %726 = vmatpush.msrb.mxu1 %v563_v62 }
 0x167   :  { %741 = vmatpush.msra.mxu2 %v620_v44  ;;  %704 = vmatpush.msra.mxu0 %v555_v1  ;;  %v593_v44 = vld [vmem:[#allocation5 + $0x1a8] sm:$0xff]  ;;  %v551_v62 = vld [vmem:[#allocation5 + $0x58] sm:$0xff]  ;;  %v544_v1 = vld [vmem:[#allocation5 + $0x20] sm:$0xff] }
 0x168   :  { %727 = vmatpush.msrb.mxu1 %v556_v2  ;;  %v545_v2 = vld [vmem:[#allocation5 + $0x28] sm:$0xff] }
 0x169   :  { %742 = vmatpush.msra.mxu2 %v613_v49  ;;  %705 = vmatpush.msra.mxu0 %v548_v5  ;;  %v588_v49 = vld [vmem:[#allocation5 + $0x180] sm:$0xff] }
 0x16b   :  { %743 = vmatpush.msra.mxu2 %v606_v54  ;;  %706 = vmatpush.msra.mxu0 %v541_v11  ;;  %v573_v54 = vld [vmem:[#allocation5 + $0x108] sm:$0xff]  ;;  %v1553_v11 = vld [vmem:[%s1763_s12] sm:$0xff]  ;;  %s1301_s12 = smov [#allocation7]  }
 0x16c   :  { %s1113_s15 = sshll.u32 %s1301_s12, 4  ;;  %s1114_s15 = int_to_ptr.vmem [resolvable:$true] %s1113_s15 }
 0x16d   :  { %744 = vmatpush.msra.mxu2 %v599_v63  ;;  %783 = vmatpush.msrb.mxu0 %v650_v15  ;;  %v552_v63 = vld [vmem:[#allocation5 + $0x60] sm:$0xff] }
 0x16f   :  { %745 = vmatpush.msra.mxu2 %v592_v3  ;;  %784 = vmatpush.msrb.mxu0 %v643_v19  ;;  %v546_v3 = vld [vmem:[#allocation5 + $0x30] sm:$0xff]  ;;  %v654_v19 = vperm.slane %v1553_v11, 0 }
 0x171   :  { %785 = vmatpush.msrb.mxu0 %v636_v23 }
 0x173   :  { %786 = vmatpush.msrb.mxu0 %v629_v27 }
 0x175   :  { %787 = vmatpush.msrb.mxu0 %v622_v30 }
 0x177   :  { %788 = vmatpush.msrb.mxu0 %v615_v34 }
 0x179   :  { %789 = vmatpush.msrb.mxu0 %v608_v38 }
 0x17b   :  { %790 = vmatpush.msrb.mxu0 %v601_v42 }
 0x1e1   :  { %v451_v7 = vpop.f32.mrf.mxu2 }
 0x1e2   :  { %v452_v8 = vadd.f32 %v1158_v6, %v451_v7  ;;  %v549_v7 = vld [vmem:[#allocation5 + $0x48] sm:$0xff] }
 0x1e3   :  { %728 = vmatpush.msrb.mxu1 %v549_v7 }
 0x1e4   :  { %1131 = vmatmul.msk.f32.vlgmr.msra.gmra.mxu1 %vm465_vm1, %v452_v8  ;;  %v585_v8 = vld [vmem:[#allocation5 + $0x168] sm:$0xff] }
 0x1e5   :  { %746 = vmatpush.msra.mxu2 %v585_v8  ;;  %729 = vmatpush.msrb.mxu1 %v542_v12  ;;  %v655_v12 = vperm.slane %v1553_v11, 1 }
 0x1e7   :  { %806 = vmatpush.msra.mxu1 %v651_v16  ;;  %747 = vmatpush.msra.mxu2 %v578_v17 }
 0x1e9   :  { %v454_v9 = vpop.f32.mrf.mxu2  ;;  %807 = vmatpush.msra.mxu1 %v644_v20  ;;  %748 = vmatpush.msra.mxu2 %v571_v21  ;;  %v657_v21 = vperm.slane %v1553_v11, 3 }
 0x1ea   :  { %v455_v10 = vadd.f32 %v1158_v6, %v454_v9 }
 0x1eb   :  { %808 = vmatpush.msra.mxu1 %v637_v24  ;;  %749 = vmatpush.msra.mxu2 %v564_v25 }
 0x1ec   :  { %1132 = vmatmul.msk.f32.gmra.mxu1 %vm465_vm1, %v455_v10  ;;  %v540_v10 = vld [vmem:[#allocation5] sm:$0xff] }
 0x1ed   :  { %683 = vmatpush.msra.mxu3 %v540_v10  ;;  %809 = vmatpush.msra.mxu1 %v630_v28 }
 0x1ee   :  { %750 = vmatpush.msra.mxu2 %v557_v32 }
 0x1ef   :  { %760 = vmatpush.msrb.mxu3 %v649_v14  ;;  %810 = vmatpush.msra.mxu1 %v623_v31 }
 0x1f0   :  { %751 = vmatpush.msra.mxu2 %v550_v36 }
 0x1f1   :  { %761 = vmatpush.msrb.mxu3 %v642_v18  ;;  %811 = vmatpush.msra.mxu1 %v616_v35 }
 0x1f2   :  { %752 = vmatpush.msra.mxu2 %v543_v40  ;;  %v659_v40 = vperm.slane %v1553_v11, 5 }
 0x1f3   :  { %762 = vmatpush.msrb.mxu3 %v635_v22  ;;  %812 = vmatpush.msra.mxu1 %v609_v39 }
 0x1f5   :  { %763 = vmatpush.msrb.mxu3 %v628_v26  ;;  %813 = vmatpush.msra.mxu1 %v602_v43 }
 0x1f7   :  { %764 = vmatpush.msrb.mxu3 %v621_v29  ;;  %814 = vmatpush.msra.mxu1 %v595_v46  ;;  %v660_v46 = vperm.slane %v1553_v11, 6 }
 0x1f9   :  { %765 = vmatpush.msrb.mxu3 %v614_v33  ;;  %815 = vmatpush.msra.mxu1 %v588_v49 }
 0x1fb   :  { %766 = vmatpush.msrb.mxu3 %v607_v37 }
 0x1fd   :  { %767 = vmatpush.msrb.mxu3 %v600_v41 }
 0x1ff   :  { %768 = vmatpush.msrb.mxu3 %v593_v44 }
 0x201   :  { %769 = vmatpush.msrb.mxu3 %v586_v47 }
 0x203   :  { %770 = vmatpush.msrb.mxu3 %v579_v50 }
 0x205   :  { %771 = vmatpush.msrb.mxu3 %v572_v53 }
 0x207   :  { %772 = vmatpush.msrb.mxu3 %v565_v56  ;;  %v658_v56 = vperm.slane %v1553_v11, 4 }
 0x261   :  { %v489_v52 = vpop.f32.mrf.mxu1 }
 0x262   :  { %v490_v55 = vadd.f32 %v1159_v45, %v489_v52  ;;  %v581_v52 = vld [vmem:[#allocation5 + $0x148] sm:$0xff] }
 0x263   :  { %816 = vmatpush.msra.mxu1 %v581_v52 }
 0x264   :  { %v495_v59 = vmax.f32 %v490_v55, 0.0  ;;  %v574_v55 = vld [vmem:[#allocation5 + $0x110] sm:$0xff] }
 0x265   :  { %817 = vmatpush.msra.mxu1 %v574_v55 }
 0x266   :  { %1133 = vmatmul.msk.f32.vlgmr.msrb.gmra.mxu2 %vm427_vm0, %v495_v59  ;;  %v558_v59 = vld [vmem:[#allocation5 + $0x90] sm:$0xff] }
 0x267   :  { %818 = vmatpush.msra.mxu1 %v567_v58  ;;  %773 = vmatpush.msrb.mxu3 %v558_v59 }
 0x269   :  { %v492_v6 = vpop.f32.mrf.mxu1  ;;  %819 = vmatpush.msra.mxu1 %v560_v61  ;;  %774 = vmatpush.msrb.mxu3 %v551_v62 }
 0x26a   :  { %v493_v9 = vadd.f32 %v1159_v45, %v492_v6  ;;  %v594_v45 = vld [vmem:[#allocation5 + $0x1b0] sm:$0xff] }
 0x26b   :  { %791 = vmatpush.msrb.mxu0 %v594_v45  ;;  %820 = vmatpush.msra.mxu1 %v553_v0 }
 0x26c   :  { %v496_v13 = vmax.f32 %v493_v9, 0.0  ;;  %775 = vmatpush.msrb.mxu3 %v544_v1 }
 0x26d   :  { %792 = vmatpush.msrb.mxu0 %v587_v48  ;;  %821 = vmatpush.msra.mxu1 %v546_v3 }
 0x26e   :  { %1134 = vmatmul.msk.f32.gmra.mxu2 %vm427_vm0, %v496_v13  ;;  %v656_v13 = vperm.slane %v1553_v11, 2 }
 0x26f   :  { %793 = vmatpush.msrb.mxu0 %v580_v51 }
 0x271   :  { %794 = vmatpush.msrb.mxu0 %v573_v54 }
 0x273   :  { %795 = vmatpush.msrb.mxu0 %v566_v57 }
 0x275   :  { %796 = vmatpush.msrb.mxu0 %v559_v60 }
 0x277   :  { %797 = vmatpush.msrb.mxu0 %v552_v63 }
 0x279   :  { %798 = vmatpush.msrb.mxu0 %v545_v2 }
 0x2e9   :  { %v532_v5 = vpop.f32.mrf.mxu2 }
 0x2ea   :  { %v533_v6 = vadd.f32 %v1160_v4, %v532_v5 }
 0x2ec   :  { %v538_v7 = vmax.f32 %v533_v6, 0.0 }
 0x2ee   :  { %684 = vmatmul.f32.vlgmr.msra.gmra.mxu3 %v538_v7  ;;  %707 = vmatmul.f32.vlgmr.msra.gmra.mxu0 %v538_v7 }
 0x2ef   :  { %730 = vmatmul.f32.vlgmr.msrb.gmra.mxu1 %v538_v7  ;;  %753 = vmatmul.f32.vlgmr.msra.gmra.mxu2 %v538_v7 }
 0x2f1   :  { %v535_v8 = vpop.f32.mrf.mxu2 }
 0x2f2   :  { %v536_v9 = vadd.f32 %v1160_v4, %v535_v8 }
 0x2f4   :  { %v539_v10 = vmax.f32 %v536_v9, 0.0 }
 0x2f6   :  { %687 = vmatmul.f32.gmra.mxu3 %v539_v10  ;;  %710 = vmatmul.f32.gmra.mxu0 %v539_v10 }
 0x2f7   :  { %733 = vmatmul.f32.gmra.mxu1 %v539_v10  ;;  %756 = vmatmul.f32.gmra.mxu2 %v539_v10 }
 0x2fe   :  { %776 = vmatmul.f32.vlgmr.msrb.gmra.mxu3 %v538_v7  ;;  %799 = vmatmul.f32.vlgmr.msrb.gmra.mxu0 %v538_v7 }
 0x2ff   :  { %822 = vmatmul.f32.vlgmr.msra.gmra.mxu1 %v538_v7 }
 0x306   :  { %779 = vmatmul.f32.gmra.mxu3 %v539_v10  ;;  %802 = vmatmul.f32.gmra.mxu0 %v539_v10 }
 0x307   :  { %825 = vmatmul.f32.gmra.mxu1 %v539_v10 }
 0x36b   :  { %v708_v14 = vpop.f32.mrf.mxu0 }
 0x36c   :  { %v709_v15 = vadd.f32 %v708_v14, %v655_v12  ;;  %v731_v16 = vpop.f32.mrf.mxu1 }
 0x36d   :  { %v732_v17 = vadd.f32 %v731_v16, %v656_v13 }
 0x36e   :  { %v1136_v18 = vmul.f32 -1.442695, %v709_v15 }
 0x36f   :  { %v1137_v20 = vmul.f32 -1.442695, %v732_v17 }
 0x370   :  { %1161 = vpow2.f32 %v1136_v18 }
 0x371   :  { %1163 = vpow2.f32 %v1137_v20  ;;  %v685_v22 = vpop.f32.mrf.mxu3 }
 0x372   :  { %v686_v23 = vadd.f32 %v685_v22, %v654_v19  ;;  %v754_v24 = vpop.f32.mrf.mxu2 }
 0x373   :  { %v755_v25 = vadd.f32 %v754_v24, %v657_v21  ;;  %v711_v26 = vpop.f32.mrf.mxu0 }
 0x374   :  { %v1135_v27 = vmul.f32 -1.442695, %v686_v23  ;;  %v712_v28 = vadd.f32 %v711_v26, %v655_v12  ;;  %v734_v29 = vpop.f32.mrf.mxu1 }
 0x375   :  { %v1138_v30 = vmul.f32 -1.442695, %v755_v25  ;;  %v735_v31 = vadd.f32 %v734_v29, %v656_v13 }
 0x376   :  { %v1162_v32 = vpop.eup %1161  ;;  %1165 = vpow2.f32 %v1135_v27  ;;  %v1143_v33 = vmul.f32 -1.442695, %v712_v28 }
 0x377   :  { %v1164_v34 = vpop.eup %1163  ;;  %v1559_v35 = vadd.f32 1.0, %v1162_v32  ;;  %1167 = vpow2.f32 %v1138_v30  ;;  %v1144_v36 = vmul.f32 -1.442695, %v735_v31 }
 0x378   :  { %v1561_v37 = vadd.f32 1.0, %v1164_v34  ;;  %1169 = vpow2.f32 %v1143_v33 }
 0x379   :  { %1171 = vrcp.f32 %v1559_v35  ;;  %v688_v38 = vpop.f32.mrf.mxu3  ;;  %v909_v44 = vand.u32 2147483647, %v1559_v35  ;;  %v911_v45 = vand.u32 2147483648, %v1559_v35  ;;  %vm905_vm2 = vweird.f32 %v1559_v35 }
 0x37a   :  { %1173 = vrcp.f32 %v1561_v37  ;;  %v757_v39 = vpop.f32.mrf.mxu2  ;;  %v689_v41 = vadd.f32 %v688_v38, %v654_v19  ;;  %v924_v48 = vand.u32 2147483647, %v1561_v37  ;;  %v926_v49 = vand.u32 2147483648, %v1561_v37 }
 0x37b   :  { %1175 = vpow2.f32 %v1144_v36  ;;  %v800_v42 = vpop.f32.mrf.mxu0  ;;  %v758_v51 = vadd.f32 %v757_v39, %v657_v21  ;;  %vm920_vm3 = vweird.f32 %v1561_v37  ;;  %vm1582_vm4 = vcmp.eq.f32.partialorder %v909_v44, 8.507059e+37 }
 0x37c   :  { %v1166_v43 = vpop.eup %1165  ;;  %v801_v54 = vadd.f32 %v800_v42, %v659_v40  ;;  %v823_v55 = vpop.f32.mrf.mxu1  ;;  %v1142_v58 = vmul.f32 -1.442695, %v689_v41  ;;  %v912_v62 = vor.u32 1.1754944e-38, %v911_v45  ;;  %vm1588_vm5 = vcmp.eq.f32.partialorder %v924_v48, 8.507059e+37 }
 0x37d   :  { %v1168_v47 = vpop.eup %1167  ;;  %v1571_v50 = vadd.f32 1.0, %v1166_v43  ;;  %v927_v2 = vor.u32 1.1754944e-38, %v926_v49  ;;  %v1592_v3 = vmul.f32 -1.442695, %v758_v51  ;;  %v824_v4 = vadd.f32 %v823_v55, %v660_v46 }
 0x37e   :  { %v1170_v52 = vpop.eup %1169  ;;  %v1573_v53 = vadd.f32 1.0, %v1168_v47  ;;  %v1599_v8 = vmul.f32 -1.442695, %v801_v54 }
 0x37f   :  { %v1172_v57 = vpop.eup %1171  ;;  %1177 = vrcp.f32 %v1571_v50  ;;  %v894_v6 = vand.u32 2147483647, %v1571_v50  ;;  %v1597_v7 = vadd.f32 1.0, %v1170_v52  ;;  %v896_v10 = vand.u32 2147483648, %v1571_v50 }
 0x380   :  { %v1174_v59 = vpop.eup %1173  ;;  %v901_v60 = vmul.f32 %v1172_v57, %v1559_v35  ;;  %1179 = vrcp.f32 %v1573_v53  ;;  %vm906_vm6 = vweird.f32 %v1172_v57  ;;  %v939_v14 = vand.u32 2147483647, %v1573_v53 }
 0x381   :  { %v1176_v63 = vpop.eup %1175  ;;  %v916_v0 = vmul.f32 %v1174_v59, %v1561_v37  ;;  %1181 = vpow2.f32 %v1142_v58  ;;  %vm921_vm7 = vweird.f32 %v1174_v59  ;;  %vm890_vm8 = vweird.f32 %v1571_v50  ;;  %vm907_vm11 = vmor %vm905_vm2, %vm906_vm6  ;;  %v777_v34 = vpop.f32.mrf.mxu3 }
 0x382   :  { %v902_v5 = vsub.f32 1.0, %v901_v60  ;;  %v1602_v12 = vadd.f32 1.0, %v1176_v63  ;;  %1183 = vrcp.f32 %v1597_v7  ;;  %vm935_vm9 = vweird.f32 %v1573_v53  ;;  %vm922_vm12 = vmor %vm920_vm3, %vm921_vm7 }
 0x383   :  { %v917_v9 = vsub.f32 1.0, %v916_v0  ;;  %vm1609_vm10 = vcmp.eq.f32.partialorder %v894_v6, 8.507059e+37  ;;  %v897_v22 = vor.u32 1.1754944e-38, %v896_v10  ;;  %v941_v24 = vand.u32 2147483648, %v1573_v53 }
 0x384   :  { %v903_v13 = vmul.f32 %v1172_v57, %v902_v5  ;;  %1185 = vrcp.f32 %v1602_v12  ;;  %vm1620_vm13 = vcmp.eq.f32.partialorder %v939_v14, 8.507059e+37  ;;  %v1141_v28 = vmul.f32 -1.442695, %v824_v4  ;;  %v826_v60 = vpop.f32.mrf.mxu1 }
 0x385   :  { %v1178_v15 = vpop.eup %1177  ;;  %v918_v16 = vmul.f32 %v1174_v59, %v917_v9  ;;  %v1014_v33 = vand.u32 2147483647, %v1597_v7  ;;  %v942_v41 = vor.u32 1.1754944e-38, %v941_v24  ;;  %vm1010_vm0 = vweird.f32 %v1597_v7 }
 0x386   :  { %v1180_v17 = vpop.eup %1179  ;;  %v904_v18 = vadd.f32 %v1172_v57, %v903_v13  ;;  %v886_v19 = vmul.f32 %v1178_v15, %v1571_v50  ;;  %vm891_vm14 = vweird.f32 %v1178_v15  ;;  %v1016_v45 = vand.u32 2147483648, %v1597_v7 }
 0x387   :  { %v919_v21 = vadd.f32 %v1174_v59, %v918_v16  ;;  %v931_v23 = vmul.f32 %v1180_v17, %v1573_v53  ;;  %v1182_v29 = vpop.eup %1181  ;;  %vm936_vm15 = vweird.f32 %v1180_v17  ;;  %vm892_vm1 = vmor %vm890_vm8, %vm891_vm14  ;;  %vm1637_vm2 = vcmp.eq.f32.partialorder %v1014_v33, 8.507059e+37 }
 0x388   :  { %v908_v25 = vsel %vm907_vm11, %v1172_v57, %v904_v18  ;;  %v887_v26 = vsub.f32 1.0, %v886_v19  ;;  %v1184_v35 = vpop.eup %1183  ;;  %v1629_v38 = vadd.f32 1.0, %v1182_v29  ;;  %vm937_vm3 = vmor %vm935_vm9, %vm936_vm15  ;;  %v1029_v54 = vand.u32 2147483647, %v1602_v12 }
 0x389   :  { %v913_v30 = vsel %vm1582_vm4, %v912_v62, %v908_v25  ;;  %v923_v31 = vsel %vm922_vm12, %v1174_v59, %v919_v21  ;;  %v932_v32 = vsub.f32 1.0, %v931_v23  ;;  %v1006_v42 = vmul.f32 %v1184_v35, %v1597_v7  ;;  %v803_v59 = vpop.f32.mrf.mxu0  ;;  %v780_v9 = vpop.f32.mrf.mxu3 }
 0x38a   :  { %1096 = vst [vmem:[#allocation7 + $0x8] sm:$0xff] %v913_v30  ;;  %v928_v36 = vsel %vm1588_vm5, %v927_v2, %v923_v31  ;;  %v888_v37 = vmul.f32 %v1178_v15, %v887_v26  ;;  %v1186_v43 = vpop.eup %1185  ;;  %1187 = vrcp.f32 %v1629_v38  ;;  %vm1011_vm4 = vweird.f32 %v1184_v35 }
 0x38b   :  { %1097 = vst [vmem:[#allocation7 + $0x10] sm:$0xff] %v928_v36  ;;  %v933_v39 = vmul.f32 %v1180_v17, %v932_v32  ;;  %v1007_v48 = vsub.f32 1.0, %v1006_v42  ;;  %v1021_v51 = vmul.f32 %v1186_v43, %v1602_v12  ;;  %1189 = vpow2.f32 %v1592_v3  ;;  %vm1012_vm6 = vmor %vm1010_vm0, %vm1011_vm4 }
 0x38c   :  { %v889_v44 = vadd.f32 %v1178_v15, %v888_v37  ;;  %vm1026_vm5 = vweird.f32 %v1186_v43  ;;  %v1031_v53 = vand.u32 2147483648, %v1602_v12  ;;  %1191 = vpow2.f32 %v1599_v8 }
 0x38d   :  { %v934_v47 = vadd.f32 %v1180_v17, %v933_v39  ;;  %v1008_v57 = vmul.f32 %v1184_v35, %v1007_v48  ;;  %v1022_v58 = vsub.f32 1.0, %v1021_v51  ;;  %1193 = vpow2.f32 %v1141_v28 }
 0x38e   :  { %v893_v52 = vsel %vm892_vm1, %v1178_v15, %v889_v44  ;;  %v778_v0 = vadd.f32 %v777_v34, %v658_v56  ;;  %v1017_v2 = vor.u32 1.1754944e-38, %v1016_v45  ;;  %vm1025_vm7 = vweird.f32 %v1602_v12 }
 0x38f   :  { %v898_v50 = vsel %vm1609_vm10, %v897_v22, %v893_v52  ;;  %v938_v55 = vsel %vm937_vm3, %v1180_v17, %v934_v47  ;;  %v1009_v62 = vadd.f32 %v1184_v35, %v1008_v57  ;;  %v1023_v63 = vmul.f32 %v1186_v43, %v1022_v58  ;;  %vm1027_vm9 = vmor %vm1025_vm7, %vm1026_vm5 }
 0x390   :  { %1095 = vst [vmem:[#allocation7] sm:$0xff] %v898_v50  ;;  %v943_v61 = vsel %vm1620_vm13, %v942_v41, %v938_v55  ;;  %v1188_v1 = vpop.eup %1187  ;;  %v804_v3 = vadd.f32 %v803_v59, %v659_v40  ;;  %v827_v4 = vadd.f32 %v826_v60, %v660_v46  ;;  %vm1030_vm8 = vcmp.eq.f32.partialorder %v1029_v54, 8.507059e+37 }
 0x391   :  { %1098 = vst [vmem:[#allocation7 + $0x18] sm:$0xff] %v943_v61  ;;  %v1013_v5 = vsel %vm1012_vm6, %v1184_v35, %v1009_v62  ;;  %v1024_v6 = vadd.f32 %v1186_v43, %v1023_v63  ;;  %v991_v8 = vmul.f32 %v1188_v1, %v1629_v38  ;;  %v1190_v10 = vpop.eup %1189  ;;  %v1032_v13 = vor.u32 1.1754944e-38, %v1031_v53 }
 0x392   :  { %v1018_v7 = vsel %vm1637_vm2, %v1017_v2, %v1013_v5  ;;  %v1139_v12 = vmul.f32 -1.442695, %v778_v0  ;;  %v1147_v14 = vmul.f32 -1.442695, %v804_v3  ;;  %v1666_v16 = vadd.f32 1.0, %v1190_v10  ;;  %v1192_v17 = vpop.eup %1191 }
 0x393   :  { %1103 = vst [vmem:[#allocation7 + $0x40] sm:$0xff] %v1018_v7  ;;  %v1028_v40 = vsel %vm1027_vm9, %v1186_v43, %v1024_v6  ;;  %v992_v15 = vsub.f32 1.0, %v991_v8  ;;  %v1148_v46 = vmul.f32 -1.442695, %v827_v4  ;;  %v1001_v19 = vand.u32 2147483648, %v1629_v38  ;;  %v1194_v21 = vpop.eup %1193 }
 0x394   :  { %v1033_v18 = vsel %vm1030_vm8, %v1032_v13, %v1028_v40  ;;  %1195 = vpow2.f32 %v1139_v12  ;;  %v781_v20 = vadd.f32 %v780_v9, %v658_v56  ;;  %vm996_vm10 = vweird.f32 %v1188_v1 }
 0x395   :  { %1104 = vst [vmem:[#allocation7 + $0x48] sm:$0xff] %v1033_v18  ;;  %v993_v22 = vmul.f32 %v1188_v1, %v992_v15  ;;  %v999_v23 = vand.u32 2147483647, %v1629_v38  ;;  %1197 = vrcp.f32 %v1666_v16  ;;  %v1673_v24 = vadd.f32 1.0, %v1192_v17 }
 0x396   :  { %v1675_v25 = vadd.f32 1.0, %v1194_v21  ;;  %1199 = vpow2.f32 %v1147_v14  ;;  %vm995_vm11 = vweird.f32 %v1629_v38  ;;  %v1002_v11 = vor.u32 1.1754944e-38, %v1001_v19 }
 0x397   :  { %v994_v26 = vadd.f32 %v1188_v1, %v993_v22  ;;  %1201 = vpow2.f32 %v1148_v46  ;;  %vm997_vm12 = vmor %vm995_vm11, %vm996_vm10  ;;  %v1146_v56 = vmul.f32 -1.442695, %v781_v20  ;;  %vm1000_vm13 = vcmp.eq.f32.partialorder %v999_v23, 8.507059e+37 }
 0x398   :  { %1203 = vrcp.f32 %v1673_v24  ;;  %v1044_v31 = vand.u32 2147483647, %v1666_v16  ;;  %v1046_v32 = vand.u32 2147483648, %v1666_v16  ;;  %vm1040_vm14 = vweird.f32 %v1666_v16 }
 0x399   :  { %v998_v27 = vsel %vm997_vm12, %v1188_v1, %v994_v26  ;;  %1205 = vrcp.f32 %v1675_v25  ;;  %v969_v39 = vand.u32 2147483647, %v1673_v24  ;;  %v971_v48 = vand.u32 2147483648, %v1673_v24 }
 0x39a   :  { %v1196_v28 = vpop.eup %1195  ;;  %v1003_v29 = vsel %vm1000_vm13, %v1002_v11, %v998_v27  ;;  %1207 = vpow2.f32 %v1146_v56  ;;  %vm1692_vm15 = vcmp.eq.f32.partialorder %v1044_v31, 8.507059e+37  ;;  %v1047_v45 = vor.u32 1.1754944e-38, %v1046_v32 }
 0x39b   :  { %v1198_v30 = vpop.eup %1197  ;;  %1102 = vst [vmem:[#allocation7 + $0x38] sm:$0xff] %v1003_v29  ;;  %v1682_v33 = vadd.f32 1.0, %v1196_v28  ;;  %vm965_vm1 = vweird.f32 %v1673_v24  ;;  %vm980_vm2 = vweird.f32 %v1675_v25  ;;  %v984_v54 = vand.u32 2147483647, %v1675_v25 }
 0x39c   :  { %v1200_v34 = vpop.eup %1199  ;;  %v1036_v35 = vmul.f32 %v1198_v30, %v1666_v16  ;;  %vm1041_vm0 = vweird.f32 %v1198_v30  ;;  %vm1703_vm3 = vcmp.eq.f32.partialorder %v969_v39, 8.507059e+37  ;;  %v972_v61 = vor.u32 1.1754944e-38, %v971_v48 }
 0x39d   :  { %v1202_v36 = vpop.eup %1201  ;;  %1209 = vrcp.f32 %v1682_v33  ;;  %v1688_v41 = vadd.f32 1.0, %v1200_v34  ;;  %vm1042_vm4 = vmor %vm1040_vm14, %vm1041_vm0  ;;  %v986_v53 = vand.u32 2147483648, %v1675_v25  ;;  %vm1714_vm7 = vcmp.eq.f32.partialorder %v984_v54, 8.507059e+37 }
 0x39e   :  { %v1204_v37 = vpop.eup %1203  ;;  %v1037_v38 = vsub.f32 1.0, %v1036_v35  ;;  %v1690_v42 = vadd.f32 1.0, %v1202_v36  ;;  %v954_v4 = vand.u32 2147483647, %v1682_v33  ;;  %v956_v9 = vand.u32 2147483648, %v1682_v33 }
 0x39f   :  { %v1206_v43 = vpop.eup %1205  ;;  %v961_v47 = vmul.f32 %v1204_v37, %v1673_v24  ;;  %1211 = vrcp.f32 %v1688_v41  ;;  %vm966_vm5 = vweird.f32 %v1204_v37  ;;  %v987_v13 = vor.u32 1.1754944e-38, %v986_v53 }
 0x3a0   :  { %v1038_v49 = vmul.f32 %v1198_v30, %v1037_v38  ;;  %v976_v51 = vmul.f32 %v1206_v43, %v1675_v25  ;;  %v1208_v50 = vpop.eup %1207  ;;  %1213 = vrcp.f32 %v1690_v42  ;;  %vm981_vm6 = vweird.f32 %v1206_v43  ;;  %vm967_vm8 = vmor %vm965_vm1, %vm966_vm5 }
 0x3a1   :  { %v962_v52 = vsub.f32 1.0, %v961_v47  ;;  %v1722_v10 = vadd.f32 1.0, %v1208_v50  ;;  %vm982_vm9 = vmor %vm980_vm2, %vm981_vm6  ;;  %vm950_vm11 = vweird.f32 %v1682_v33  ;;  %vm955_vm12 = vcmp.eq.f32.partialorder %v954_v4, 8.507059e+37 }
 0x3a2   :  { %v1039_v55 = vadd.f32 %v1198_v30, %v1038_v49  ;;  %v977_v58 = vsub.f32 1.0, %v976_v51  ;;  %v957_v20 = vor.u32 1.1754944e-38, %v956_v9  ;;  %v1076_v21 = vand.u32 2147483648, %v1688_v41 }
 0x3a3   :  { %v1210_v59 = vpop.eup %1209  ;;  %v963_v60 = vmul.f32 %v1204_v37, %v962_v52  ;;  %1215 = vrcp.f32 %v1722_v10  ;;  %v1074_v23 = vand.u32 2147483647, %v1688_v41  ;;  %v1089_v26 = vand.u32 2147483647, %v1690_v42 }
 0x3a4   :  { %v1043_v62 = vsel %vm1042_vm4, %v1198_v30, %v1039_v55  ;;  %v978_v63 = vmul.f32 %v1206_v43, %v977_v58  ;;  %v946_v0 = vmul.f32 %v1210_v59, %v1682_v33  ;;  %vm951_vm10 = vweird.f32 %v1210_v59 }
 0x3a5   :  { %v1048_v1 = vsel %vm1692_vm15, %v1047_v45, %v1043_v62  ;;  %v964_v2 = vadd.f32 %v1204_v37, %v963_v60  ;;  %v1212_v5 = vpop.eup %1211  ;;  %vm952_vm13 = vmor %vm950_vm11, %vm951_vm10  ;;  %vm1070_vm15 = vweird.f32 %v1688_v41  ;;  %v1091_v11 = vand.u32 2147483648, %v1690_v42 }
 0x3a6   :  { %1105 = vst [vmem:[#allocation7 + $0x50] sm:$0xff] %v1048_v1  ;;  %v979_v6 = vadd.f32 %v1206_v43, %v978_v63  ;;  %v947_v8 = vsub.f32 1.0, %v946_v0  ;;  %v1066_v12 = vmul.f32 %v1212_v5, %v1688_v41  ;;  %v1214_v14 = vpop.eup %1213  ;;  %vm1071_vm14 = vweird.f32 %v1212_v5 }
 0x3a7   :  { %v968_v7 = vsel %vm967_vm8, %v1204_v37, %v964_v2  ;;  %v1081_v18 = vmul.f32 %v1214_v14, %v1690_v42  ;;  %vm1086_vm0 = vweird.f32 %v1214_v14  ;;  %vm1072_vm1 = vmor %vm1070_vm15, %vm1071_vm14  ;;  %v1077_v30 = vor.u32 1.1754944e-38, %v1076_v21 }
 0x3a8   :  { %v973_v40 = vsel %vm1703_vm3, %v972_v61, %v968_v7  ;;  %v983_v15 = vsel %vm982_vm9, %v1206_v43, %v979_v6  ;;  %v948_v16 = vmul.f32 %v1210_v59, %v947_v8  ;;  %v1067_v17 = vsub.f32 1.0, %v1066_v12 }
 0x3a9   :  { %1100 = vst [vmem:[#allocation7 + $0x28] sm:$0xff] %v973_v40  ;;  %v988_v46 = vsel %vm1714_vm7, %v987_v13, %v983_v15  ;;  %v1082_v24 = vsub.f32 1.0, %v1081_v18  ;;  %v1216_v29 = vpop.eup %1215  ;;  %vm1085_vm2 = vweird.f32 %v1690_v42  ;;  %vm1075_vm3 = vcmp.eq.f32.partialorder %v1074_v23, 8.507059e+37 }
 0x3aa   :  { %1101 = vst [vmem:[#allocation7 + $0x30] sm:$0xff] %v988_v46  ;;  %v949_v19 = vadd.f32 %v1210_v59, %v948_v16  ;;  %v1068_v22 = vmul.f32 %v1212_v5, %v1067_v17  ;;  %v1051_v33 = vmul.f32 %v1216_v29, %v1722_v10  ;;  %vm1087_vm4 = vmor %vm1085_vm2, %vm1086_vm0  ;;  %v1092_v35 = vor.u32 1.1754944e-38, %v1091_v11 }
 0x3ab   :  { %v1083_v28 = vmul.f32 %v1214_v14, %v1082_v24  ;;  %vm1090_vm5 = vcmp.eq.f32.partialorder %v1089_v26, 8.507059e+37  ;;  %v1061_v39 = vand.u32 2147483648, %v1722_v10  ;;  %vm1056_vm6 = vweird.f32 %v1216_v29 }
 0x3ac   :  { %v953_v25 = vsel %vm952_vm13, %v1210_v59, %v949_v19  ;;  %v1069_v27 = vadd.f32 %v1212_v5, %v1068_v22  ;;  %v1052_v37 = vsub.f32 1.0, %v1051_v33  ;;  %v1059_v42 = vand.u32 2147483647, %v1722_v10 }
 0x3ad   :  { %v958_v56 = vsel %vm955_vm12, %v957_v20, %v953_v25  ;;  %v1084_v32 = vadd.f32 %v1214_v14, %v1083_v28  ;;  %vm1055_vm7 = vweird.f32 %v1722_v10  ;;  %v1062_v44 = vor.u32 1.1754944e-38, %v1061_v39 }
 0x3ae   :  { %1099 = vst [vmem:[#allocation7 + $0x20] sm:$0xff] %v958_v56  ;;  %v1073_v31 = vsel %vm1072_vm1, %v1212_v5, %v1069_v27  ;;  %v1053_v41 = vmul.f32 %v1216_v29, %v1052_v37  ;;  %vm1057_vm8 = vmor %vm1055_vm7, %vm1056_vm6  ;;  %vm1060_vm9 = vcmp.eq.f32.partialorder %v1059_v42, 8.507059e+37 }
 0x3af   :  { %v1078_v34 = vsel %vm1075_vm3, %v1077_v30, %v1073_v31  ;;  %v1088_v36 = vsel %vm1087_vm4, %v1214_v14, %v1084_v32 }
 0x3b0   :  { %1107 = vst [vmem:[#allocation7 + $0x60] sm:$0xff] %v1078_v34  ;;  %v1093_v38 = vsel %vm1090_vm5, %v1092_v35, %v1088_v36  ;;  %v1054_v43 = vadd.f32 %v1216_v29, %v1053_v41 }
 0x3b1   :  { %1108 = vst [vmem:[#allocation7 + $0x68] sm:$0xff] %v1093_v38 }
 0x3b2   :  { %v1058_v45 = vsel %vm1057_vm8, %v1216_v29, %v1054_v43 }
 0x3b3   :  { %v1063_v47 = vsel %vm1060_vm9, %v1062_v44, %v1058_v45 }
 0x3b4   :  { %1106 = vst [vmem:[#allocation7 + $0x58] sm:$0xff] %v1063_v47 }
 0x3b5   :  { %1121 = dma.vmem_to_hbm [thread:$0]  %s1114_s15, 1792, %s1116_s3, [#allocation4], %s1299_s20, %s1299_s20, %s1300_s21  }
 0x3b6   :  { %1293 = dma.done.wait [#allocation4], 1792  }
 0x3b7   :  { %1294 = vsyncadd [#allocation4], 4294965504 }
 0x3b8   :  { %1126 = vsyncpa [#allocation3], 1 }
 0x3b9   :  { %1127 = vsyncpa [#allocation6], 1 }
 0x3ba   :  { %1128 = vsyncpa [#allocation4], 1 }

</bundles_post_ra>
